<compile_context>
chip_gen: v5e
topology: v5e:2x2
jax: 0.10.0
libtpu: 0.0.40
codegen_flags: <defaults>
</compile_context>

<pallas_src>
import functools

import jax
import jax.numpy as jnp
from jax.experimental import pallas as pl
from jax.experimental.pallas import tpu as pltpu


def _round_up(x, m):
    return (x + m - 1) // m * m


@functools.lru_cache(maxsize=None)
def _vmem_ceiling_bytes():
    """Generation-aware VMEM ceiling (leave headroom for compiler scratch)."""
    try:
        cap = int(pltpu.get_tpu_info().vmem_capacity_bytes)
    except Exception:
        cap = 64 << 20          # conservative fallback (v7x per-TC size)
    return int(min(cap * 3 // 4, 100 << 20))


def _const_spec(shape, index_map):
    """BlockSpec for a grid-invariant block: single-buffered when supported."""
    try:
        return pl.BlockSpec(shape, index_map, pipeline_mode=pl.Buffered(1))
    except Exception:
        return pl.BlockSpec(shape, index_map)


def _gru_recurrent_kernel(gi_ref, h0_ref, whh_ref, bhn_ref, out_ref, hn_ref,
                          *, tc, t_valid):
    """Recurrent part of one GRU layer.  Grid axis 0 walks time chunks.

    gi_ref  : (Tc, Bp, 3Hp) f32  precomputed x @ W_ih^T + biases (r/z biases
                                 pre-summed, b_in included), gate order [r,z,n]
    h0_ref  : (Bp, Hp)     f32   initial hidden state
    whh_ref : (Hp, 3Hp)    bf16  hidden weights, pre-transposed
    bhn_ref : (1, Hp)      f32   b_hn (added before the r * (...) product)
    out_ref : (Tc, Bp, Hp) f32   outputs for this chunk
    hn_ref  : (Bp, Hp)     f32   running hidden state, resident across chunks
    """
    hp = hn_ref.shape[-1]
    chunk = pl.program_id(0)

    @pl.when(chunk == 0)
    def _():
        hn_ref[...] = h0_ref[...]

    whh = whh_ref[...]            # bf16, read once per chunk
    bhn = bhn_ref[...]

    def step(i, h):
        gi_t = gi_ref[i]                                        # (Bp, 3Hp)
        gh = jnp.dot(h.astype(jnp.bfloat16), whh,
                     preferred_element_type=jnp.float32)        # (Bp, 3Hp) f32
        # n's hidden-side operand is independent of r -> ready early, so the
        # tanh can issue as soon as r lands (EUP is a single unit).
        n_pre = gh[:, 2 * hp:] + bhn
        # One sigmoid over the contiguous (Bp, 2Hp) r|z slab instead of two.
        rz = jax.nn.sigmoid(gi_t[:, :2 * hp] + gh[:, :2 * hp])
        r = rz[:, :hp]
        z = rz[:, hp:]
        n = jnp.tanh(gi_t[:, 2 * hp:] + r * n_pre)
        h_new = n + z * (h - n)                     # == (1 - z) * n + z * h
        if t_valid is not None:
            # Freeze h on padded trailing timesteps so h_n stays correct.
            h_new = jnp.where(chunk * tc + i < t_valid, h_new, h)
        out_ref[i] = h_new
        return h_new

    hn_ref[...] = jax.lax.fori_loop(0, tc, step, hn_ref[...], unroll=True)


def _gru_layer_recurrence(gi, h0, whh_t, bhn, *, tc, t_valid):
    """Run the recurrent kernel over a precomputed input projection gi."""
    t_pad, bp, three_hp = gi.shape
    hp = three_hp // 3
    n_chunks = t_pad // tc

    # VMEM estimate from the actual block shapes: f32 gi/out double-buffered,
    # grid-invariant blocks single-buffered, bf16 W_hh, resident f32 h_n.
    est = (4 * 2 * tc * bp * 3 * hp      # gi chunks (2 buffers)
           + 4 * 2 * tc * bp * hp        # out chunks (2 buffers)
           + 4 * bp * hp                 # h0 (single-buffered)
           + 2 * hp * 3 * hp             # W_hh^T (bf16, single-buffered)
           + 4 * hp                      # b_hn
           + 4 * bp * hp)                # resident h_n
    ceil_b = _vmem_ceiling_bytes()
    vmem_limit = int(min(max(2 * est, 16 << 20), ceil_b))
    vmem_limit = max(vmem_limit, min(est + (2 << 20), ceil_b))

    kernel = functools.partial(_gru_recurrent_kernel, tc=tc, t_valid=t_valid)
    out, hn = pl.pallas_call(
        kernel,
        out_shape=(
            jax.ShapeDtypeStruct((t_pad, bp, hp), jnp.float32),
            jax.ShapeDtypeStruct((bp, hp), jnp.float32),
        ),
        grid_spec=pltpu.PrefetchScalarGridSpec(
            num_scalar_prefetch=0,
            grid=(n_chunks,),
            in_specs=[
                pl.BlockSpec((tc, bp, 3 * hp), lambda c: (c, 0, 0)),  # gi
                _const_spec((bp, hp), lambda c: (0, 0)),              # h0
                _const_spec((hp, 3 * hp), lambda c: (0, 0)),          # W_hh^T
                _const_spec((1, hp), lambda c: (0, 0)),               # b_hn
            ],
            out_specs=[
                pl.BlockSpec((tc, bp, hp), lambda c: (c, 0, 0)),      # out
                pl.BlockSpec((bp, hp), lambda c: (0, 0)),             # h_n
            ],
        ),
        compiler_params=pltpu.CompilerParams(
            dimension_semantics=("arbitrary",),     # sequential recurrence
            vmem_limit_bytes=vmem_limit),
    )(gi, h0, whh_t, bhn)
    return out, hn


def _pick_chunk(t, bp, hp):
    """Largest time-chunk whose pipelined gi/out blocks fit ~half the VMEM
    budget; capped at 64 steps to bound the unrolled inner loop."""
    budget = _vmem_ceiling_bytes() // 2
    per_step = 4 * (2 * bp * 3 * hp + 2 * bp * hp)   # f32, double-buffered
    const = 2 * 4 * bp * hp + 2 * hp * 3 * hp + 4 * hp
    avail = max(budget - const, per_step)
    return int(max(1, min(t, 64, avail // per_step)))


@jax.jit
def gru_forward(x, h_0, params):
    """Equivalent of GRU.forward(x, h_0).

    x      : (B, T, input_size)    -- batch_first=True
    h_0    : (num_layers, B, H)
    params : tuple of per-layer dicts 'wih_t','whh_t' (bf16), 'b_rzn','bhn'
    returns (out, h_n): out (B, T, H), h_n (num_layers, B, H)
    """
    b, t, _ = x.shape
    hid = h_0.shape[-1]
    hp = params[0]["whh_t"].shape[0]          # padded hidden (multiple of 128)
    bp = _round_up(b, 8)

    tc = _pick_chunk(t, bp, hp)               # timesteps per grid step
    t_pad = _round_up(t, tc)
    t_valid = t if t_pad != t else None

    # Time-major; pad batch to a sublane multiple and time to a chunk multiple.
    x_tm = jnp.transpose(x, (1, 0, 2))                       # (T, B, D)
    x_tm = jnp.pad(x_tm, ((0, t_pad - t), (0, bp - b), (0, 0)))
    # NOTE: padded hidden lanes of h_0 MUST be zero -- the zero-padded weight
    # columns then keep those lanes exactly zero on every step.
    h0_p = jnp.pad(h_0, ((0, 0), (0, bp - b), (0, hp - hid)))

    layer_in = x_tm
    h_ns = []
    for l, p in enumerate(params):
        # Hoisted input projection: one large bf16 MXU matmul over all steps,
        # f32 accumulate.
        gi = jnp.dot(layer_in.astype(jnp.bfloat16), p["wih_t"],
                     preferred_element_type=jnp.float32) + p["b_rzn"]
        out_l, hn_l = _gru_layer_recurrence(gi, h0_p[l], p["whh_t"], p["bhn"],
                                            tc=tc, t_valid=t_valid)
        # TODO(synk): inter-layer dropout (training mode only) not applied.
        h_ns.append(hn_l)
        layer_in = out_l

    out = jnp.transpose(layer_in[:t, :b, :hid], (1, 0, 2))   # (B, T, H)
    h_n = jnp.stack(h_ns, axis=0)[:, :b, :hid]               # (L, B, H)
    return out, h_n


def _pad_gate_cols(w, h, hp):
    """(rows, 3H) -> (rows, 3Hp): each gate's H cols placed in an Hp slot."""
    rows = w.shape[0]
    w3 = w.reshape(rows, 3, h)
    return jnp.zeros((rows, 3, hp), w.dtype).at[:, :, :h].set(w3).reshape(
        rows, 3 * hp)


def prepare_gru_params(raw_params, hidden_size):
    """Convert PyTorch-layout GRU weights into the padded, transposed,
    bias-precombined, bf16-weight layout the kernel consumes.

    raw_params: list of dicts 'w_ih' (3H,in), 'w_hh' (3H,H), 'b_ih' (3H,),
                'b_hh' (3H,) in PyTorch gate order [r, z, n].
    """
    h = hidden_size
    hp = _round_up(h, 128)                     # lane-aligned gates / outputs
    prepared = []
    for l, p in enumerate(raw_params):
        w_ih, w_hh = p["w_ih"], p["w_hh"]
        b_ih, b_hh = p["b_ih"], p["b_hh"]
        in_dim = w_ih.shape[1]

        wih_t = _pad_gate_cols(jnp.transpose(w_ih), h, hp)   # (in, 3Hp)
        if l > 0:
            # Deeper layers consume the previous layer's padded Hp-wide
            # output; the padded input columns hit zero weight rows.
            wih_t = jnp.pad(wih_t, ((0, hp - in_dim), (0, 0)))

        whh_t = _pad_gate_cols(jnp.transpose(w_hh), h, hp)   # (H, 3Hp)
        whh_t = jnp.pad(whh_t, ((0, hp - h), (0, 0)))        # (Hp, 3Hp)

        # r/z biases pre-summed; b_in folded into gi; b_hn kept separate.
        b_r = b_ih[0:h] + b_hh[0:h]
        b_z = b_ih[h:2 * h] + b_hh[h:2 * h]
        b_in = b_ih[2 * h:3 * h]
        b_rzn = jnp.zeros((3, hp), jnp.float32).at[:, :h].set(
            jnp.stack([b_r, b_z, b_in])).reshape(3 * hp)
        bhn = jnp.zeros((1, hp), jnp.float32).at[0, :h].set(b_hh[2 * h:3 * h])

        prepared.append({"wih_t": wih_t.astype(jnp.bfloat16),
                         "whh_t": whh_t.astype(jnp.bfloat16),
                         "b_rzn": b_rzn, "bhn": bhn})
    return tuple(prepared)


def init_gru_params(key, input_size, hidden_size, num_layers):
    """Deterministic init mirroring nn.GRU's U(-1/sqrt(H), 1/sqrt(H))."""
    k = 1.0 / float(hidden_size) ** 0.5
    raw = []
    for l in range(num_layers):
        in_dim = input_size if l == 0 else hidden_size
        key, k1, k2, k3, k4 = jax.random.split(key, 5)
        raw.append({
            "w_ih": jax.random.uniform(k1, (3 * hidden_size, in_dim),
                                       jnp.float32, -k, k),
            "w_hh": jax.random.uniform(k2, (3 * hidden_size, hidden_size),
                                       jnp.float32, -k, k),
            "b_ih": jax.random.uniform(k3, (3 * hidden_size,),
                                       jnp.float32, -k, k),
            "b_hh": jax.random.uniform(k4, (3 * hidden_size,),
                                       jnp.float32, -k, k),
        })
    return prepare_gru_params(raw, hidden_size)


if __name__ == "__main__":
    batch = 2
    seq = 8
    input_size = 16
    hidden_size = 32
    num_layers = 2

    key = jax.random.PRNGKey(0)
    key, kx, kh, kp = jax.random.split(key, 4)

    x = jax.random.normal(kx, (batch, seq, input_size), jnp.float32)
    h_0 = jax.random.normal(kh, (num_layers, batch, hidden_size), jnp.float32)
    params = init_gru_params(kp, input_size, hidden_size, num_layers)

    out, h_n = gru_forward(x, h_0, params)
    jax.block_until_ready((out, h_n))

    assert out.shape == (batch, seq, hidden_size)
    assert h_n.shape == (num_layers, batch, hidden_size)
    print("KERNEL_OK")
</pallas_src>

<mosaic_0001>
module attributes {stable_mosaic.version = 11 : i64} {
  func.func @_gru_recurrent_kernel(%arg0: i32, %arg1: memref<8x8x384xf32, #tpu.memory_space<vmem>>, %arg2: memref<8x128xf32, #tpu.memory_space<vmem>>, %arg3: memref<128x384xbf16, #tpu.memory_space<vmem>>, %arg4: memref<1x128xf32, #tpu.memory_space<vmem>>, %arg5: memref<8x8x128xf32, #tpu.memory_space<vmem>>, %arg6: memref<8x128xf32, #tpu.memory_space<vmem>>) attributes {dimension_semantics = [#tpu.dimension_semantics<arbitrary>], iteration_bounds = array<i64: 1>, scalar_prefetch = 0 : i64, scratch_operands = 0 : i64, tpu.core_type = #tpu.core_type<tc>, window_params = [{transform_indices = @transform_0, window_bounds = array<i64: 8, 8, 384>}, {pipeline_mode = #tpu.pipeline_mode<synchronous>, transform_indices = @transform_1, window_bounds = array<i64: 8, 128>}, {pipeline_mode = #tpu.pipeline_mode<synchronous>, transform_indices = @transform_2, window_bounds = array<i64: 128, 384>}, {pipeline_mode = #tpu.pipeline_mode<synchronous>, transform_indices = @transform_3, window_bounds = array<i64: 1, 128>}, {transform_indices = @transform_4, window_bounds = array<i64: 8, 8, 128>}, {pipeline_mode = #tpu.pipeline_mode<synchronous>, transform_indices = @transform_5, window_bounds = array<i64: 8, 128>}]} {
    %c0_i32 = arith.constant 0 : i32
    %0 = arith.cmpi eq, %arg0, %c0_i32 : i32
    %1 = arith.extui %0 : i1 to i32
    %c0_i32_0 = arith.constant 0 : i32
    %2 = arith.cmpi ne, %1, %c0_i32_0 : i32
    scf.if %2 {
      %c0_56 = arith.constant 0 : index
      %c0_57 = arith.constant 0 : index
      %239 = vector.load %arg2[%c0_56, %c0_57] : memref<8x128xf32, #tpu.memory_space<vmem>>, vector<8x128xf32>
      %c0_58 = arith.constant 0 : index
      %c0_59 = arith.constant 0 : index
      %240 = vector.load %arg6[%c0_58, %c0_59] : memref<8x128xf32, #tpu.memory_space<vmem>>, vector<8x128xf32>
      tpu.vector_store %arg6[%c0_58, %c0_59], %239 {strides = array<i32>} : memref<8x128xf32, #tpu.memory_space<vmem>>, vector<8x128xf32>,
    } else {
    }
    %c0 = arith.constant 0 : index
    %c0_1 = arith.constant 0 : index
    %3 = vector.load %arg3[%c0, %c0_1] : memref<128x384xbf16, #tpu.memory_space<vmem>>, vector<128x384xbf16>
    %c0_2 = arith.constant 0 : index
    %c0_3 = arith.constant 0 : index
    %4 = vector.load %arg4[%c0_2, %c0_3] : memref<1x128xf32, #tpu.memory_space<vmem>>, vector<1x128xf32>
    %c0_4 = arith.constant 0 : index
    %c0_5 = arith.constant 0 : index
    %5 = vector.load %arg6[%c0_4, %c0_5] : memref<8x128xf32, #tpu.memory_space<vmem>>, vector<8x128xf32>
    %c0_i32_6 = arith.constant 0 : i32
    %6 = arith.index_cast %c0_i32_6 : i32 to index
    %c0_7 = arith.constant 0 : index
    %c0_8 = arith.constant 0 : index
    %7 = vector.load %arg1[%6, %c0_7, %c0_8] : memref<8x8x384xf32, #tpu.memory_space<vmem>>, vector<1x8x384xf32>
    %8 = vector.shape_cast %7 : vector<1x8x384xf32> to vector<8x384xf32>
    %9 = arith.truncf %5 : vector<8x128xf32> to vector<8x128xbf16>
    %cst = arith.constant dense<0.000000e+00> : vector<8x384xf32>
    %10 = tpu.matmul %9, %3, %cst {dimension_numbers = #tpu.dot_dimension_numbers<[1], [0], [0], [1], [0, 0, 1, 1], [], []>} : vector<8x128xbf16>, vector<128x384xbf16>, vector<8x384xf32> -> vector<8x384xf32>
    %11 = vector.extract_strided_slice %10 {offsets = [0, 256], sizes = [8, 128], strides = [1, 1]} : vector<8x384xf32> to vector<8x128xf32>
    %12 = vector.broadcast %4 : vector<1x128xf32> to vector<8x128xf32>
    %13 = arith.addf %11, %12 : vector<8x128xf32>
    %14 = vector.extract_strided_slice %8 {offsets = [0, 0], sizes = [8, 256], strides = [1, 1]} : vector<8x384xf32> to vector<8x256xf32>
    %15 = vector.extract_strided_slice %10 {offsets = [0, 0], sizes = [8, 256], strides = [1, 1]} : vector<8x384xf32> to vector<8x256xf32>
    %16 = arith.addf %14, %15 : vector<8x256xf32>
    %17 = arith.negf %16 : vector<8x256xf32>
    %18 = math.exp %17 : vector<8x256xf32>
    %cst_9 = arith.constant 1.000000e+00 : f32
    %19 = vector.broadcast %cst_9 : f32 to vector<8x256xf32>
    %20 = arith.addf %19, %18 : vector<8x256xf32>
    %21 = arith.divf %19, %20 : vector<8x256xf32>
    %22 = vector.extract_strided_slice %21 {offsets = [0, 0], sizes = [8, 128], strides = [1, 1]} : vector<8x256xf32> to vector<8x128xf32>
    %23 = vector.extract_strided_slice %21 {offsets = [0, 128], sizes = [8, 128], strides = [1, 1]} : vector<8x256xf32> to vector<8x128xf32>
    %24 = vector.extract_strided_slice %8 {offsets = [0, 256], sizes = [8, 128], strides = [1, 1]} : vector<8x384xf32> to vector<8x128xf32>
    %25 = arith.mulf %22, %13 : vector<8x128xf32>
    %26 = arith.addf %24, %25 : vector<8x128xf32>
    %27 = math.tanh %26 : vector<8x128xf32>
    %28 = arith.subf %5, %27 : vector<8x128xf32>
    %29 = arith.mulf %23, %28 : vector<8x128xf32>
    %30 = arith.addf %27, %29 : vector<8x128xf32>
    %31 = arith.index_cast %c0_i32_6 : i32 to index
    %c0_10 = arith.constant 0 : index
    %c0_11 = arith.constant 0 : index
    %32 = vector.load %arg5[%31, %c0_10, %c0_11] : memref<8x8x128xf32, #tpu.memory_space<vmem>>, vector<1x8x128xf32>
    %33 = vector.shape_cast %32 : vector<1x8x128xf32> to vector<8x128xf32>
    %34 = vector.shape_cast %30 : vector<8x128xf32> to vector<1x8x128xf32>
    tpu.vector_store %arg5[%31, %c0_10, %c0_11], %34 {strides = array<i32>} : memref<8x8x128xf32, #tpu.memory_space<vmem>>, vector<1x8x128xf32>,
    %c1_i32 = arith.constant 1 : i32
    %35 = arith.index_cast %c1_i32 : i32 to index
    %c0_12 = arith.constant 0 : index
    %c0_13 = arith.constant 0 : index
    %36 = vector.load %arg1[%35, %c0_12, %c0_13] : memref<8x8x384xf32, #tpu.memory_space<vmem>>, vector<1x8x384xf32>
    %37 = vector.shape_cast %36 : vector<1x8x384xf32> to vector<8x384xf32>
    %38 = arith.truncf %30 : vector<8x128xf32> to vector<8x128xbf16>
    %cst_14 = arith.constant dense<0.000000e+00> : vector<8x384xf32>
    %39 = tpu.matmul %38, %3, %cst_14 {dimension_numbers = #tpu.dot_dimension_numbers<[1], [0], [0], [1], [0, 0, 1, 1], [], []>} : vector<8x128xbf16>, vector<128x384xbf16>, vector<8x384xf32> -> vector<8x384xf32>
    %40 = vector.extract_strided_slice %39 {offsets = [0, 256], sizes = [8, 128], strides = [1, 1]} : vector<8x384xf32> to vector<8x128xf32>
    %41 = vector.broadcast %4 : vector<1x128xf32> to vector<8x128xf32>
    %42 = arith.addf %40, %41 : vector<8x128xf32>
    %43 = vector.extract_strided_slice %37 {offsets = [0, 0], sizes = [8, 256], strides = [1, 1]} : vector<8x384xf32> to vector<8x256xf32>
    %44 = vector.extract_strided_slice %39 {offsets = [0, 0], sizes = [8, 256], strides = [1, 1]} : vector<8x384xf32> to vector<8x256xf32>
    %45 = arith.addf %43, %44 : vector<8x256xf32>
    %46 = arith.negf %45 : vector<8x256xf32>
    %47 = math.exp %46 : vector<8x256xf32>
    %cst_15 = arith.constant 1.000000e+00 : f32
    %48 = vector.broadcast %cst_15 : f32 to vector<8x256xf32>
    %49 = arith.addf %48, %47 : vector<8x256xf32>
    %50 = arith.divf %48, %49 : vector<8x256xf32>
    %51 = vector.extract_strided_slice %50 {offsets = [0, 0], sizes = [8, 128], strides = [1, 1]} : vector<8x256xf32> to vector<8x128xf32>
    %52 = vector.extract_strided_slice %50 {offsets = [0, 128], sizes = [8, 128], strides = [1, 1]} : vector<8x256xf32> to vector<8x128xf32>
    %53 = vector.extract_strided_slice %37 {offsets = [0, 256], sizes = [8, 128], strides = [1, 1]} : vector<8x384xf32> to vector<8x128xf32>
    %54 = arith.mulf %51, %42 : vector<8x128xf32>
    %55 = arith.addf %53, %54 : vector<8x128xf32>
    %56 = math.tanh %55 : vector<8x128xf32>
    %57 = arith.subf %30, %56 : vector<8x128xf32>
    %58 = arith.mulf %52, %57 : vector<8x128xf32>
    %59 = arith.addf %56, %58 : vector<8x128xf32>
    %60 = arith.index_cast %c1_i32 : i32 to index
    %c0_16 = arith.constant 0 : index
    %c0_17 = arith.constant 0 : index
    %61 = vector.load %arg5[%60, %c0_16, %c0_17] : memref<8x8x128xf32, #tpu.memory_space<vmem>>, vector<1x8x128xf32>
    %62 = vector.shape_cast %61 : vector<1x8x128xf32> to vector<8x128xf32>
    %63 = vector.shape_cast %59 : vector<8x128xf32> to vector<1x8x128xf32>
    tpu.vector_store %arg5[%60, %c0_16, %c0_17], %63 {strides = array<i32>} : memref<8x8x128xf32, #tpu.memory_space<vmem>>, vector<1x8x128xf32>,
    %c2_i32 = arith.constant 2 : i32
    %64 = arith.index_cast %c2_i32 : i32 to index
    %c0_18 = arith.constant 0 : index
    %c0_19 = arith.constant 0 : index
    %65 = vector.load %arg1[%64, %c0_18, %c0_19] : memref<8x8x384xf32, #tpu.memory_space<vmem>>, vector<1x8x384xf32>
    %66 = vector.shape_cast %65 : vector<1x8x384xf32> to vector<8x384xf32>
    %67 = arith.truncf %59 : vector<8x128xf32> to vector<8x128xbf16>
    %cst_20 = arith.constant dense<0.000000e+00> : vector<8x384xf32>
    %68 = tpu.matmul %67, %3, %cst_20 {dimension_numbers = #tpu.dot_dimension_numbers<[1], [0], [0], [1], [0, 0, 1, 1], [], []>} : vector<8x128xbf16>, vector<128x384xbf16>, vector<8x384xf32> -> vector<8x384xf32>
    %69 = vector.extract_strided_slice %68 {offsets = [0, 256], sizes = [8, 128], strides = [1, 1]} : vector<8x384xf32> to vector<8x128xf32>
    %70 = vector.broadcast %4 : vector<1x128xf32> to vector<8x128xf32>
    %71 = arith.addf %69, %70 : vector<8x128xf32>
    %72 = vector.extract_strided_slice %66 {offsets = [0, 0], sizes = [8, 256], strides = [1, 1]} : vector<8x384xf32> to vector<8x256xf32>
    %73 = vector.extract_strided_slice %68 {offsets = [0, 0], sizes = [8, 256], strides = [1, 1]} : vector<8x384xf32> to vector<8x256xf32>
    %74 = arith.addf %72, %73 : vector<8x256xf32>
    %75 = arith.negf %74 : vector<8x256xf32>
    %76 = math.exp %75 : vector<8x256xf32>
    %cst_21 = arith.constant 1.000000e+00 : f32
    %77 = vector.broadcast %cst_21 : f32 to vector<8x256xf32>
    %78 = arith.addf %77, %76 : vector<8x256xf32>
    %79 = arith.divf %77, %78 : vector<8x256xf32>
    %80 = vector.extract_strided_slice %79 {offsets = [0, 0], sizes = [8, 128], strides = [1, 1]} : vector<8x256xf32> to vector<8x128xf32>
    %81 = vector.extract_strided_slice %79 {offsets = [0, 128], sizes = [8, 128], strides = [1, 1]} : vector<8x256xf32> to vector<8x128xf32>
    %82 = vector.extract_strided_slice %66 {offsets = [0, 256], sizes = [8, 128], strides = [1, 1]} : vector<8x384xf32> to vector<8x128xf32>
    %83 = arith.mulf %80, %71 : vector<8x128xf32>
    %84 = arith.addf %82, %83 : vector<8x128xf32>
    %85 = math.tanh %84 : vector<8x128xf32>
    %86 = arith.subf %59, %85 : vector<8x128xf32>
    %87 = arith.mulf %81, %86 : vector<8x128xf32>
    %88 = arith.addf %85, %87 : vector<8x128xf32>
    %89 = arith.index_cast %c2_i32 : i32 to index
    %c0_22 = arith.constant 0 : index
    %c0_23 = arith.constant 0 : index
    %90 = vector.load %arg5[%89, %c0_22, %c0_23] : memref<8x8x128xf32, #tpu.memory_space<vmem>>, vector<1x8x128xf32>
    %91 = vector.shape_cast %90 : vector<1x8x128xf32> to vector<8x128xf32>
    %92 = vector.shape_cast %88 : vector<8x128xf32> to vector<1x8x128xf32>
    tpu.vector_store %arg5[%89, %c0_22, %c0_23], %92 {strides = array<i32>} : memref<8x8x128xf32, #tpu.memory_space<vmem>>, vector<1x8x128xf32>,
    %c3_i32 = arith.constant 3 : i32
    %93 = arith.index_cast %c3_i32 : i32 to index
    %c0_24 = arith.constant 0 : index
    %c0_25 = arith.constant 0 : index
    %94 = vector.load %arg1[%93, %c0_24, %c0_25] : memref<8x8x384xf32, #tpu.memory_space<vmem>>, vector<1x8x384xf32>
    %95 = vector.shape_cast %94 : vector<1x8x384xf32> to vector<8x384xf32>
    %96 = arith.truncf %88 : vector<8x128xf32> to vector<8x128xbf16>
    %cst_26 = arith.constant dense<0.000000e+00> : vector<8x384xf32>
    %97 = tpu.matmul %96, %3, %cst_26 {dimension_numbers = #tpu.dot_dimension_numbers<[1], [0], [0], [1], [0, 0, 1, 1], [], []>} : vector<8x128xbf16>, vector<128x384xbf16>, vector<8x384xf32> -> vector<8x384xf32>
    %98 = vector.extract_strided_slice %97 {offsets = [0, 256], sizes = [8, 128], strides = [1, 1]} : vector<8x384xf32> to vector<8x128xf32>
    %99 = vector.broadcast %4 : vector<1x128xf32> to vector<8x128xf32>
    %100 = arith.addf %98, %99 : vector<8x128xf32>
    %101 = vector.extract_strided_slice %95 {offsets = [0, 0], sizes = [8, 256], strides = [1, 1]} : vector<8x384xf32> to vector<8x256xf32>
    %102 = vector.extract_strided_slice %97 {offsets = [0, 0], sizes = [8, 256], strides = [1, 1]} : vector<8x384xf32> to vector<8x256xf32>
    %103 = arith.addf %101, %102 : vector<8x256xf32>
    %104 = arith.negf %103 : vector<8x256xf32>
    %105 = math.exp %104 : vector<8x256xf32>
    %cst_27 = arith.constant 1.000000e+00 : f32
    %106 = vector.broadcast %cst_27 : f32 to vector<8x256xf32>
    %107 = arith.addf %106, %105 : vector<8x256xf32>
    %108 = arith.divf %106, %107 : vector<8x256xf32>
    %109 = vector.extract_strided_slice %108 {offsets = [0, 0], sizes = [8, 128], strides = [1, 1]} : vector<8x256xf32> to vector<8x128xf32>
    %110 = vector.extract_strided_slice %108 {offsets = [0, 128], sizes = [8, 128], strides = [1, 1]} : vector<8x256xf32> to vector<8x128xf32>
    %111 = vector.extract_strided_slice %95 {offsets = [0, 256], sizes = [8, 128], strides = [1, 1]} : vector<8x384xf32> to vector<8x128xf32>
    %112 = arith.mulf %109, %100 : vector<8x128xf32>
    %113 = arith.addf %111, %112 : vector<8x128xf32>
    %114 = math.tanh %113 : vector<8x128xf32>
    %115 = arith.subf %88, %114 : vector<8x128xf32>
    %116 = arith.mulf %110, %115 : vector<8x128xf32>
    %117 = arith.addf %114, %116 : vector<8x128xf32>
    %118 = arith.index_cast %c3_i32 : i32 to index
    %c0_28 = arith.constant 0 : index
    %c0_29 = arith.constant 0 : index
    %119 = vector.load %arg5[%118, %c0_28, %c0_29] : memref<8x8x128xf32, #tpu.memory_space<vmem>>, vector<1x8x128xf32>
    %120 = vector.shape_cast %119 : vector<1x8x128xf32> to vector<8x128xf32>
    %121 = vector.shape_cast %117 : vector<8x128xf32> to vector<1x8x128xf32>
    tpu.vector_store %arg5[%118, %c0_28, %c0_29], %121 {strides = array<i32>} : memref<8x8x128xf32, #tpu.memory_space<vmem>>, vector<1x8x128xf32>,
    %c4_i32 = arith.constant 4 : i32
    %122 = arith.index_cast %c4_i32 : i32 to index
    %c0_30 = arith.constant 0 : index
    %c0_31 = arith.constant 0 : index
    %123 = vector.load %arg1[%122, %c0_30, %c0_31] : memref<8x8x384xf32, #tpu.memory_space<vmem>>, vector<1x8x384xf32>
    %124 = vector.shape_cast %123 : vector<1x8x384xf32> to vector<8x384xf32>
    %125 = arith.truncf %117 : vector<8x128xf32> to vector<8x128xbf16>
    %cst_32 = arith.constant dense<0.000000e+00> : vector<8x384xf32>
    %126 = tpu.matmul %125, %3, %cst_32 {dimension_numbers = #tpu.dot_dimension_numbers<[1], [0], [0], [1], [0, 0, 1, 1], [], []>} : vector<8x128xbf16>, vector<128x384xbf16>, vector<8x384xf32> -> vector<8x384xf32>
    %127 = vector.extract_strided_slice %126 {offsets = [0, 256], sizes = [8, 128], strides = [1, 1]} : vector<8x384xf32> to vector<8x128xf32>
    %128 = vector.broadcast %4 : vector<1x128xf32> to vector<8x128xf32>
    %129 = arith.addf %127, %128 : vector<8x128xf32>
    %130 = vector.extract_strided_slice %124 {offsets = [0, 0], sizes = [8, 256], strides = [1, 1]} : vector<8x384xf32> to vector<8x256xf32>
    %131 = vector.extract_strided_slice %126 {offsets = [0, 0], sizes = [8, 256], strides = [1, 1]} : vector<8x384xf32> to vector<8x256xf32>
    %132 = arith.addf %130, %131 : vector<8x256xf32>
    %133 = arith.negf %132 : vector<8x256xf32>
    %134 = math.exp %133 : vector<8x256xf32>
    %cst_33 = arith.constant 1.000000e+00 : f32
    %135 = vector.broadcast %cst_33 : f32 to vector<8x256xf32>
    %136 = arith.addf %135, %134 : vector<8x256xf32>
    %137 = arith.divf %135, %136 : vector<8x256xf32>
    %138 = vector.extract_strided_slice %137 {offsets = [0, 0], sizes = [8, 128], strides = [1, 1]} : vector<8x256xf32> to vector<8x128xf32>
    %139 = vector.extract_strided_slice %137 {offsets = [0, 128], sizes = [8, 128], strides = [1, 1]} : vector<8x256xf32> to vector<8x128xf32>
    %140 = vector.extract_strided_slice %124 {offsets = [0, 256], sizes = [8, 128], strides = [1, 1]} : vector<8x384xf32> to vector<8x128xf32>
    %141 = arith.mulf %138, %129 : vector<8x128xf32>
    %142 = arith.addf %140, %141 : vector<8x128xf32>
    %143 = math.tanh %142 : vector<8x128xf32>
    %144 = arith.subf %117, %143 : vector<8x128xf32>
    %145 = arith.mulf %139, %144 : vector<8x128xf32>
    %146 = arith.addf %143, %145 : vector<8x128xf32>
    %147 = arith.index_cast %c4_i32 : i32 to index
    %c0_34 = arith.constant 0 : index
    %c0_35 = arith.constant 0 : index
    %148 = vector.load %arg5[%147, %c0_34, %c0_35] : memref<8x8x128xf32, #tpu.memory_space<vmem>>, vector<1x8x128xf32>
    %149 = vector.shape_cast %148 : vector<1x8x128xf32> to vector<8x128xf32>
    %150 = vector.shape_cast %146 : vector<8x128xf32> to vector<1x8x128xf32>
    tpu.vector_store %arg5[%147, %c0_34, %c0_35], %150 {strides = array<i32>} : memref<8x8x128xf32, #tpu.memory_space<vmem>>, vector<1x8x128xf32>,
    %c5_i32 = arith.constant 5 : i32
    %151 = arith.index_cast %c5_i32 : i32 to index
    %c0_36 = arith.constant 0 : index
    %c0_37 = arith.constant 0 : index
    %152 = vector.load %arg1[%151, %c0_36, %c0_37] : memref<8x8x384xf32, #tpu.memory_space<vmem>>, vector<1x8x384xf32>
    %153 = vector.shape_cast %152 : vector<1x8x384xf32> to vector<8x384xf32>
    %154 = arith.truncf %146 : vector<8x128xf32> to vector<8x128xbf16>
    %cst_38 = arith.constant dense<0.000000e+00> : vector<8x384xf32>
    %155 = tpu.matmul %154, %3, %cst_38 {dimension_numbers = #tpu.dot_dimension_numbers<[1], [0], [0], [1], [0, 0, 1, 1], [], []>} : vector<8x128xbf16>, vector<128x384xbf16>, vector<8x384xf32> -> vector<8x384xf32>
    %156 = vector.extract_strided_slice %155 {offsets = [0, 256], sizes = [8, 128], strides = [1, 1]} : vector<8x384xf32> to vector<8x128xf32>
    %157 = vector.broadcast %4 : vector<1x128xf32> to vector<8x128xf32>
    %158 = arith.addf %156, %157 : vector<8x128xf32>
    %159 = vector.extract_strided_slice %153 {offsets = [0, 0], sizes = [8, 256], strides = [1, 1]} : vector<8x384xf32> to vector<8x256xf32>
    %160 = vector.extract_strided_slice %155 {offsets = [0, 0], sizes = [8, 256], strides = [1, 1]} : vector<8x384xf32> to vector<8x256xf32>
    %161 = arith.addf %159, %160 : vector<8x256xf32>
    %162 = arith.negf %161 : vector<8x256xf32>
    %163 = math.exp %162 : vector<8x256xf32>
    %cst_39 = arith.constant 1.000000e+00 : f32
    %164 = vector.broadcast %cst_39 : f32 to vector<8x256xf32>
    %165 = arith.addf %164, %163 : vector<8x256xf32>
    %166 = arith.divf %164, %165 : vector<8x256xf32>
    %167 = vector.extract_strided_slice %166 {offsets = [0, 0], sizes = [8, 128], strides = [1, 1]} : vector<8x256xf32> to vector<8x128xf32>
    %168 = vector.extract_strided_slice %166 {offsets = [0, 128], sizes = [8, 128], strides = [1, 1]} : vector<8x256xf32> to vector<8x128xf32>
    %169 = vector.extract_strided_slice %153 {offsets = [0, 256], sizes = [8, 128], strides = [1, 1]} : vector<8x384xf32> to vector<8x128xf32>
    %170 = arith.mulf %167, %158 : vector<8x128xf32>
    %171 = arith.addf %169, %170 : vector<8x128xf32>
    %172 = math.tanh %171 : vector<8x128xf32>
    %173 = arith.subf %146, %172 : vector<8x128xf32>
    %174 = arith.mulf %168, %173 : vector<8x128xf32>
    %175 = arith.addf %172, %174 : vector<8x128xf32>
    %176 = arith.index_cast %c5_i32 : i32 to index
    %c0_40 = arith.constant 0 : index
    %c0_41 = arith.constant 0 : index
    %177 = vector.load %arg5[%176, %c0_40, %c0_41] : memref<8x8x128xf32, #tpu.memory_space<vmem>>, vector<1x8x128xf32>
    %178 = vector.shape_cast %177 : vector<1x8x128xf32> to vector<8x128xf32>
    %179 = vector.shape_cast %175 : vector<8x128xf32> to vector<1x8x128xf32>
    tpu.vector_store %arg5[%176, %c0_40, %c0_41], %179 {strides = array<i32>} : memref<8x8x128xf32, #tpu.memory_space<vmem>>, vector<1x8x128xf32>,
    %c6_i32 = arith.constant 6 : i32
    %180 = arith.index_cast %c6_i32 : i32 to index
    %c0_42 = arith.constant 0 : index
    %c0_43 = arith.constant 0 : index
    %181 = vector.load %arg1[%180, %c0_42, %c0_43] : memref<8x8x384xf32, #tpu.memory_space<vmem>>, vector<1x8x384xf32>
    %182 = vector.shape_cast %181 : vector<1x8x384xf32> to vector<8x384xf32>
    %183 = arith.truncf %175 : vector<8x128xf32> to vector<8x128xbf16>
    %cst_44 = arith.constant dense<0.000000e+00> : vector<8x384xf32>
    %184 = tpu.matmul %183, %3, %cst_44 {dimension_numbers = #tpu.dot_dimension_numbers<[1], [0], [0], [1], [0, 0, 1, 1], [], []>} : vector<8x128xbf16>, vector<128x384xbf16>, vector<8x384xf32> -> vector<8x384xf32>
    %185 = vector.extract_strided_slice %184 {offsets = [0, 256], sizes = [8, 128], strides = [1, 1]} : vector<8x384xf32> to vector<8x128xf32>
    %186 = vector.broadcast %4 : vector<1x128xf32> to vector<8x128xf32>
    %187 = arith.addf %185, %186 : vector<8x128xf32>
    %188 = vector.extract_strided_slice %182 {offsets = [0, 0], sizes = [8, 256], strides = [1, 1]} : vector<8x384xf32> to vector<8x256xf32>
    %189 = vector.extract_strided_slice %184 {offsets = [0, 0], sizes = [8, 256], strides = [1, 1]} : vector<8x384xf32> to vector<8x256xf32>
    %190 = arith.addf %188, %189 : vector<8x256xf32>
    %191 = arith.negf %190 : vector<8x256xf32>
    %192 = math.exp %191 : vector<8x256xf32>
    %cst_45 = arith.constant 1.000000e+00 : f32
    %193 = vector.broadcast %cst_45 : f32 to vector<8x256xf32>
    %194 = arith.addf %193, %192 : vector<8x256xf32>
    %195 = arith.divf %193, %194 : vector<8x256xf32>
    %196 = vector.extract_strided_slice %195 {offsets = [0, 0], sizes = [8, 128], strides = [1, 1]} : vector<8x256xf32> to vector<8x128xf32>
    %197 = vector.extract_strided_slice %195 {offsets = [0, 128], sizes = [8, 128], strides = [1, 1]} : vector<8x256xf32> to vector<8x128xf32>
    %198 = vector.extract_strided_slice %182 {offsets = [0, 256], sizes = [8, 128], strides = [1, 1]} : vector<8x384xf32> to vector<8x128xf32>
    %199 = arith.mulf %196, %187 : vector<8x128xf32>
    %200 = arith.addf %198, %199 : vector<8x128xf32>
    %201 = math.tanh %200 : vector<8x128xf32>
    %202 = arith.subf %175, %201 : vector<8x128xf32>
    %203 = arith.mulf %197, %202 : vector<8x128xf32>
    %204 = arith.addf %201, %203 : vector<8x128xf32>
    %205 = arith.index_cast %c6_i32 : i32 to index
    %c0_46 = arith.constant 0 : index
    %c0_47 = arith.constant 0 : index
    %206 = vector.load %arg5[%205, %c0_46, %c0_47] : memref<8x8x128xf32, #tpu.memory_space<vmem>>, vector<1x8x128xf32>
    %207 = vector.shape_cast %206 : vector<1x8x128xf32> to vector<8x128xf32>
    %208 = vector.shape_cast %204 : vector<8x128xf32> to vector<1x8x128xf32>
    tpu.vector_store %arg5[%205, %c0_46, %c0_47], %208 {strides = array<i32>} : memref<8x8x128xf32, #tpu.memory_space<vmem>>, vector<1x8x128xf32>,
    %c7_i32 = arith.constant 7 : i32
    %209 = arith.index_cast %c7_i32 : i32 to index
    %c0_48 = arith.constant 0 : index
    %c0_49 = arith.constant 0 : index
    %210 = vector.load %arg1[%209, %c0_48, %c0_49] : memref<8x8x384xf32, #tpu.memory_space<vmem>>, vector<1x8x384xf32>
    %211 = vector.shape_cast %210 : vector<1x8x384xf32> to vector<8x384xf32>
    %212 = arith.truncf %204 : vector<8x128xf32> to vector<8x128xbf16>
    %cst_50 = arith.constant dense<0.000000e+00> : vector<8x384xf32>
    %213 = tpu.matmul %212, %3, %cst_50 {dimension_numbers = #tpu.dot_dimension_numbers<[1], [0], [0], [1], [0, 0, 1, 1], [], []>} : vector<8x128xbf16>, vector<128x384xbf16>, vector<8x384xf32> -> vector<8x384xf32>
    %214 = vector.extract_strided_slice %213 {offsets = [0, 256], sizes = [8, 128], strides = [1, 1]} : vector<8x384xf32> to vector<8x128xf32>
    %215 = vector.broadcast %4 : vector<1x128xf32> to vector<8x128xf32>
    %216 = arith.addf %214, %215 : vector<8x128xf32>
    %217 = vector.extract_strided_slice %211 {offsets = [0, 0], sizes = [8, 256], strides = [1, 1]} : vector<8x384xf32> to vector<8x256xf32>
    %218 = vector.extract_strided_slice %213 {offsets = [0, 0], sizes = [8, 256], strides = [1, 1]} : vector<8x384xf32> to vector<8x256xf32>
    %219 = arith.addf %217, %218 : vector<8x256xf32>
    %220 = arith.negf %219 : vector<8x256xf32>
    %221 = math.exp %220 : vector<8x256xf32>
    %cst_51 = arith.constant 1.000000e+00 : f32
    %222 = vector.broadcast %cst_51 : f32 to vector<8x256xf32>
    %223 = arith.addf %222, %221 : vector<8x256xf32>
    %224 = arith.divf %222, %223 : vector<8x256xf32>
    %225 = vector.extract_strided_slice %224 {offsets = [0, 0], sizes = [8, 128], strides = [1, 1]} : vector<8x256xf32> to vector<8x128xf32>
    %226 = vector.extract_strided_slice %224 {offsets = [0, 128], sizes = [8, 128], strides = [1, 1]} : vector<8x256xf32> to vector<8x128xf32>
    %227 = vector.extract_strided_slice %211 {offsets = [0, 256], sizes = [8, 128], strides = [1, 1]} : vector<8x384xf32> to vector<8x128xf32>
    %228 = arith.mulf %225, %216 : vector<8x128xf32>
    %229 = arith.addf %227, %228 : vector<8x128xf32>
    %230 = math.tanh %229 : vector<8x128xf32>
    %231 = arith.subf %204, %230 : vector<8x128xf32>
    %232 = arith.mulf %226, %231 : vector<8x128xf32>
    %233 = arith.addf %230, %232 : vector<8x128xf32>
    %234 = arith.index_cast %c7_i32 : i32 to index
    %c0_52 = arith.constant 0 : index
    %c0_53 = arith.constant 0 : index
    %235 = vector.load %arg5[%234, %c0_52, %c0_53] : memref<8x8x128xf32, #tpu.memory_space<vmem>>, vector<1x8x128xf32>
    %236 = vector.shape_cast %235 : vector<1x8x128xf32> to vector<8x128xf32>
    %237 = vector.shape_cast %233 : vector<8x128xf32> to vector<1x8x128xf32>
    tpu.vector_store %arg5[%234, %c0_52, %c0_53], %237 {strides = array<i32>} : memref<8x8x128xf32, #tpu.memory_space<vmem>>, vector<1x8x128xf32>,
    %c8_i32 = arith.constant 8 : i32
    %c0_54 = arith.constant 0 : index
    %c0_55 = arith.constant 0 : index
    %238 = vector.load %arg6[%c0_54, %c0_55] : memref<8x128xf32, #tpu.memory_space<vmem>>, vector<8x128xf32>
    tpu.vector_store %arg6[%c0_54, %c0_55], %233 {strides = array<i32>} : memref<8x128xf32, #tpu.memory_space<vmem>>, vector<8x128xf32>,
    return
  }
  func.func @transform_0(%arg0: i32) -> (i32, i32, i32) {
    %c0_i32 = arith.constant 0 : i32
    %c0_i32_0 = arith.constant 0 : i32
    %c0_i32_1 = arith.constant 0 : i32
    return %arg0, %c0_i32, %c0_i32_0 : i32, i32, i32
  }
  func.func @transform_1(%arg0: i32) -> (i32, i32) {
    %c0_i32 = arith.constant 0 : i32
    %c0_i32_0 = arith.constant 0 : i32
    %c0_i32_1 = arith.constant 0 : i32
    return %c0_i32, %c0_i32_0 : i32, i32
  }
  func.func @transform_2(%arg0: i32) -> (i32, i32) {
    %c0_i32 = arith.constant 0 : i32
    %c0_i32_0 = arith.constant 0 : i32
    %c0_i32_1 = arith.constant 0 : i32
    return %c0_i32, %c0_i32_0 : i32, i32
  }
  func.func @transform_3(%arg0: i32) -> (i32, i32) {
    %c0_i32 = arith.constant 0 : i32
    %c0_i32_0 = arith.constant 0 : i32
    %c0_i32_1 = arith.constant 0 : i32
    return %c0_i32, %c0_i32_0 : i32, i32
  }
  func.func @transform_4(%arg0: i32) -> (i32, i32, i32) {
    %c0_i32 = arith.constant 0 : i32
    %c0_i32_0 = arith.constant 0 : i32
    %c0_i32_1 = arith.constant 0 : i32
    return %arg0, %c0_i32, %c0_i32_0 : i32, i32, i32
  }
  func.func @transform_5(%arg0: i32) -> (i32, i32) {
    %c0_i32 = arith.constant 0 : i32
    %c0_i32_0 = arith.constant 0 : i32
    %c0_i32_1 = arith.constant 0 : i32
    return %c0_i32, %c0_i32_0 : i32, i32
  }
}

</mosaic_0001>

<bundles_post_ra>
// kernel: gru_forward.2
= control target key start
LH: loop header
LB: loop body
LE: loop exit
PB: predicated region body
PF: predicated region fallthrough
CT: control target
= control target key end

     0   :  { %s1759_s2 = inlined_call_operand.vmem [shape: bf16[128,384], index: 2, kind: input, shape index: {}]   ;;  %s1760_s1 = inlined_call_operand.vmem [shape: f32[8,128], index: 1, kind: input, shape index: {}]   ;;  %s1761_s3 = inlined_call_operand.vmem [shape: f32[1,128], index: 3, kind: input, shape index: {}]   ;;  %s1762_s0 = inlined_call_operand.vmem [shape: f32[8,8,384], index: 0, kind: input, shape index: {}]   ;;  %s1763_s4 = inlined_call_operand.vmem [shape: f32[8,8,128], index: 4, kind: output, shape index: {0}]   ;;  %s1764_s5 = inlined_call_operand.vmem [shape: f32[8,128], index: 5, kind: output, shape index: {1}]  }
   0x1   :  { %v1027_v0 = vld [vmem:[%s1759_s2 + $0xa8] sm:$0xf]  ;;  %v1103_v1 = vld [vmem:[%s1759_s2 + $0xb0] sm:$0xf0]  ;;  %v1102_v2 = vld [vmem:[%s1759_s2 + $0xac] sm:$0xf] }
   0x2   :  { %v1226_v3 = vor.u32 %v1103_v1, %v1027_v0  ;;  %v1029_v4 = vld [vmem:[%s1759_s2 + $0xb4] sm:$0xf0]  ;;  %v1015_v5 = vld [vmem:[%s1759_s2 + $0x90] sm:$0xf]  ;;  %v1100_v6 = vld [vmem:[%s1759_s2 + $0x98] sm:$0xf0] }
   0x3   :  { %v1237_v7 = vor.u32 %v1102_v2, %v1029_v4  ;;  %v1099_v8 = vld [vmem:[%s1759_s2 + $0x94] sm:$0xf]  ;;  %v1017_v9 = vld [vmem:[%s1759_s2 + $0x9c] sm:$0xf0]  ;;  %v1246_v10 = vor.u32 %v1100_v6, %v1015_v5  ;;  %v1003_v12 = vld [vmem:[%s1759_s2 + $0x78] sm:$0xf] }
   0x4   :  { %191 = vmatpush.bf16.msra.mxu0 %v1226_v3  ;;  %286 = vmatpush.bf16.msra.mxu3 %v1226_v3  ;;  %v1250_v11 = vor.u32 %v1099_v8, %v1017_v9  ;;  %v1097_v13 = vld [vmem:[%s1759_s2 + $0x80] sm:$0xf0]  ;;  %v1096_v14 = vld [vmem:[%s1759_s2 + $0x7c] sm:$0xf]  ;;  %v1005_v15 = vld [vmem:[%s1759_s2 + $0x84] sm:$0xf0] }
   0x5   :  { %204 = vmatpush.bf16.msra.mxu1 %v1237_v7  ;;  %v1035_v16 = vld [vmem:[%s1759_s2 + $0xb0] sm:$0xf]  ;;  %v1104_v17 = vld [vmem:[%s1759_s2 + $0xb8] sm:$0xf0]  ;;  %v1273_v19 = vor.u32 %v1097_v13, %v1003_v12  ;;  %v1023_v20 = vld [vmem:[%s1759_s2 + $0x98] sm:$0xf]  ;;  %v1283_v22 = vor.u32 %v1096_v14, %v1005_v15 }
   0x6   :  { %v1270_v18 = vor.u32 %v1104_v17, %v1035_v16  ;;  %v1101_v21 = vld [vmem:[%s1759_s2 + $0xa0] sm:$0xf0]  ;;  %v991_v23 = vld [vmem:[%s1759_s2 + $0x60] sm:$0xf]  ;;  %v1094_v24 = vld [vmem:[%s1759_s2 + $0x68] sm:$0xf0] }
   0x7   :  { %v1093_v25 = vld [vmem:[%s1759_s2 + $0x64] sm:$0xf]  ;;  %v1295_v26 = vor.u32 %v1101_v21, %v1023_v20  ;;  %v993_v27 = vld [vmem:[%s1759_s2 + $0x6c] sm:$0xf0]  ;;  %v1011_v28 = vld [vmem:[%s1759_s2 + $0x80] sm:$0xf]  ;;  %v1307_v30 = vor.u32 %v1094_v24, %v991_v23 }
   0x8   :  { %192 = vmatpush.bf16.msra.mxu0 %v1246_v10  ;;  %287 = vmatpush.bf16.msra.mxu3 %v1246_v10  ;;  %v1098_v29 = vld [vmem:[%s1759_s2 + $0x88] sm:$0xf0]  ;;  %v1311_v31 = vor.u32 %v1093_v25, %v993_v27  ;;  %v979_v32 = vld [vmem:[%s1759_s2 + $0x48] sm:$0xf]  ;;  %v1091_v33 = vld [vmem:[%s1759_s2 + $0x50] sm:$0xf0] }
   0x9   :  { %205 = vmatpush.bf16.msra.mxu1 %v1250_v11  ;;  %217 = vmatpush.bf16.msra.mxu2 %v1270_v18  ;;  %v1090_v34 = vld [vmem:[%s1759_s2 + $0x4c] sm:$0xf]  ;;  %v1323_v35 = vor.u32 %v1098_v29, %v1011_v28  ;;  %v981_v36 = vld [vmem:[%s1759_s2 + $0x54] sm:$0xf0]  ;;  %v999_v37 = vld [vmem:[%s1759_s2 + $0x68] sm:$0xf]  ;;  %v1335_v39 = vor.u32 %v1091_v33, %v979_v32 }
   0xa   :  { %v1095_v38 = vld [vmem:[%s1759_s2 + $0x70] sm:$0xf0]  ;;  %v1339_v40 = vor.u32 %v1090_v34, %v981_v36  ;;  %v967_v41 = vld [vmem:[%s1759_s2 + $0x30] sm:$0xf]  ;;  %v1088_v42 = vld [vmem:[%s1759_s2 + $0x38] sm:$0xf0] }
   0xb   :  { %v1087_v43 = vld [vmem:[%s1759_s2 + $0x34] sm:$0xf]  ;;  %v1351_v44 = vor.u32 %v1095_v38, %v999_v37  ;;  %v969_v45 = vld [vmem:[%s1759_s2 + $0x3c] sm:$0xf0]  ;;  %v987_v46 = vld [vmem:[%s1759_s2 + $0x50] sm:$0xf]  ;;  %v1363_v48 = vor.u32 %v1088_v42, %v967_v41 }
   0xc   :  { %193 = vmatpush.bf16.msra.mxu0 %v1273_v19  ;;  %288 = vmatpush.bf16.msra.mxu3 %v1273_v19  ;;  %v1092_v47 = vld [vmem:[%s1759_s2 + $0x58] sm:$0xf0]  ;;  %v1367_v49 = vor.u32 %v1087_v43, %v969_v45  ;;  %v955_v50 = vld [vmem:[%s1759_s2 + $0x18] sm:$0xf]  ;;  %v1085_v51 = vld [vmem:[%s1759_s2 + $0x20] sm:$0xf0] }
   0xd   :  { %206 = vmatpush.bf16.msra.mxu1 %v1283_v22  ;;  %218 = vmatpush.bf16.msra.mxu2 %v1295_v26  ;;  %v1084_v52 = vld [vmem:[%s1759_s2 + $0x1c] sm:$0xf]  ;;  %v1379_v53 = vor.u32 %v1092_v47, %v987_v46  ;;  %v957_v54 = vld [vmem:[%s1759_s2 + $0x24] sm:$0xf0]  ;;  %v975_v55 = vld [vmem:[%s1759_s2 + $0x38] sm:$0xf]  ;;  %v1391_v57 = vor.u32 %v1085_v51, %v955_v50 }
   0xe   :  { %v1089_v56 = vld [vmem:[%s1759_s2 + $0x40] sm:$0xf0]  ;;  %v1395_v58 = vor.u32 %v1084_v52, %v957_v54  ;;  %v943_v59 = vld [vmem:[%s1759_s2] sm:$0xf]  ;;  %v1082_v60 = vld [vmem:[%s1759_s2 + $0x8] sm:$0xf0] }
   0xf   :  { %v1081_v61 = vld [vmem:[%s1759_s2 + $0x4] sm:$0xf]  ;;  %v1407_v62 = vor.u32 %v1089_v56, %v975_v55  ;;  %v945_v63 = vld [vmem:[%s1759_s2 + $0xc] sm:$0xf0]  ;;  %v963_v0 = vld [vmem:[%s1759_s2 + $0x20] sm:$0xf]  ;;  %v1419_v2 = vor.u32 %v1082_v60, %v943_v59 }
  0x10   :  { %194 = vmatpush.bf16.msra.mxu0 %v1307_v30  ;;  %289 = vmatpush.bf16.msra.mxu3 %v1307_v30  ;;  %v1086_v1 = vld [vmem:[%s1759_s2 + $0x28] sm:$0xf0]  ;;  %v1424_v4 = vld [vmem:[%s1760_s1] sm:$0xff]  ;;  %v1428_v5 = vor.u32 %v1081_v61, %v945_v63  ;;  %v951_v8 = vld [vmem:[%s1759_s2 + $0x8] sm:$0xf] }
  0x11   :  { %207 = vmatpush.bf16.msra.mxu1 %v1311_v31  ;;  %219 = vmatpush.bf16.msra.mxu2 %v1323_v35  ;;  %v1431_v6 = vor.u32 %v1086_v1, %v963_v0  ;;  %v1083_v9 = vld [vmem:[%s1759_s2 + $0x10] sm:$0xf0]  ;;  %v62_v12 = vpack.c.bf16 %v1424_v4, %v1424_v4  ;;  %v59_v14 = vld [vmem:[%s1762_s0] sm:$0xff]  ;;  %v60_v15 = vld [vmem:[%s1762_s0 + $0x8] sm:$0xff] }
  0x12   :  { %v1445_v13 = vor.u32 %v1083_v9, %v951_v8  ;;  %v1513_v42 = vld [vmem:[%s1761_s3] ss:$0 sm:$0xff]  ;;  %v61_v59 = vld [vmem:[%s1762_s0 + $0x10] sm:$0xff] }
  0x14   :  { %195 = vmatpush.bf16.msra.mxu0 %v1335_v39  ;;  %290 = vmatpush.bf16.msra.mxu3 %v1335_v39 }
  0x15   :  { %208 = vmatpush.bf16.msra.mxu1 %v1339_v40  ;;  %220 = vmatpush.bf16.msra.mxu2 %v1351_v44 }
  0x18   :  { %196 = vmatpush.bf16.msra.mxu0 %v1363_v48  ;;  %291 = vmatpush.bf16.msra.mxu3 %v1363_v48 }
  0x19   :  { %209 = vmatpush.bf16.msra.mxu1 %v1367_v49  ;;  %221 = vmatpush.bf16.msra.mxu2 %v1379_v53 }
  0x1c   :  { %197 = vmatpush.bf16.msra.mxu0 %v1391_v57  ;;  %292 = vmatpush.bf16.msra.mxu3 %v1391_v57 }
  0x1d   :  { %210 = vmatpush.bf16.msra.mxu1 %v1395_v58  ;;  %222 = vmatpush.bf16.msra.mxu2 %v1407_v62 }
  0x20   :  { %198 = vmatpush.bf16.msra.mxu0 %v1419_v2  ;;  %293 = vmatpush.bf16.msra.mxu3 %v1419_v2 }
  0x21   :  { %211 = vmatpush.bf16.msra.mxu1 %v1428_v5  ;;  %223 = vmatpush.bf16.msra.mxu2 %v1431_v6 }
  0x23   :  { %199 = vmatmul.bf16.vlgmr.msra.gmra.mxu0 %v62_v12 }
  0x24   :  { %299 = vmatpush.bf16.msrb.mxu0 %v1237_v7  ;;  %392 = vmatpush.bf16.msrb.mxu3 %v1237_v7 }
  0x25   :  { %312 = vmatpush.bf16.msrb.mxu1 %v1270_v18  ;;  %224 = vmatpush.bf16.msra.mxu2 %v1445_v13 }
  0x26   :  { %212 = vmatmul.bf16.vlgmr.msra.gmra.mxu1 %v62_v12 }
  0x28   :  { %300 = vmatpush.bf16.msrb.mxu0 %v1250_v11  ;;  %393 = vmatpush.bf16.msrb.mxu3 %v1250_v11 }
  0x29   :  { %313 = vmatpush.bf16.msrb.mxu1 %v1295_v26  ;;  %379 = vmatpush.bf16.msrb.mxu2 %v1226_v3 }
  0x2a   :  { %225 = vmatmul.bf16.vlgmr.msra.gmra.mxu2 %v62_v12 }
  0x2c   :  { %301 = vmatpush.bf16.msrb.mxu0 %v1283_v22  ;;  %394 = vmatpush.bf16.msrb.mxu3 %v1283_v22 }
  0x2d   :  { %314 = vmatpush.bf16.msrb.mxu1 %v1323_v35  ;;  %380 = vmatpush.bf16.msrb.mxu2 %v1246_v10 }
  0x30   :  { %302 = vmatpush.bf16.msrb.mxu0 %v1311_v31  ;;  %395 = vmatpush.bf16.msrb.mxu3 %v1311_v31 }
  0x31   :  { %315 = vmatpush.bf16.msrb.mxu1 %v1351_v44  ;;  %381 = vmatpush.bf16.msrb.mxu2 %v1273_v19 }
  0x34   :  { %303 = vmatpush.bf16.msrb.mxu0 %v1339_v40  ;;  %396 = vmatpush.bf16.msrb.mxu3 %v1339_v40 }
  0x35   :  { %316 = vmatpush.bf16.msrb.mxu1 %v1379_v53  ;;  %382 = vmatpush.bf16.msrb.mxu2 %v1307_v30 }
  0x38   :  { %304 = vmatpush.bf16.msrb.mxu0 %v1367_v49  ;;  %397 = vmatpush.bf16.msrb.mxu3 %v1367_v49 }
  0x39   :  { %317 = vmatpush.bf16.msrb.mxu1 %v1407_v62  ;;  %383 = vmatpush.bf16.msrb.mxu2 %v1335_v39 }
  0x3c   :  { %305 = vmatpush.bf16.msrb.mxu0 %v1395_v58  ;;  %398 = vmatpush.bf16.msrb.mxu3 %v1395_v58 }
  0x3d   :  { %318 = vmatpush.bf16.msrb.mxu1 %v1431_v6  ;;  %384 = vmatpush.bf16.msrb.mxu2 %v1363_v48 }
  0x40   :  { %306 = vmatpush.bf16.msrb.mxu0 %v1428_v5  ;;  %399 = vmatpush.bf16.msrb.mxu3 %v1428_v5 }
  0x41   :  { %319 = vmatpush.bf16.msrb.mxu1 %v1445_v13  ;;  %385 = vmatpush.bf16.msrb.mxu2 %v1391_v57 }
  0x44   :  { %405 = vmatpush.bf16.msra.mxu0 %v1270_v18 }
  0x45   :  { %472 = vmatpush.bf16.msra.mxu1 %v1226_v3  ;;  %386 = vmatpush.bf16.msrb.mxu2 %v1419_v2 }
  0x48   :  { %406 = vmatpush.bf16.msra.mxu0 %v1295_v26 }
  0x49   :  { %485 = vmatpush.bf16.msra.mxu2 %v1237_v7  ;;  %473 = vmatpush.bf16.msra.mxu1 %v1246_v10 }
  0x4c   :  { %407 = vmatpush.bf16.msra.mxu0 %v1323_v35 }
  0x4d   :  { %486 = vmatpush.bf16.msra.mxu2 %v1250_v11  ;;  %474 = vmatpush.bf16.msra.mxu1 %v1273_v19 }
  0x50   :  { %408 = vmatpush.bf16.msra.mxu0 %v1351_v44 }
  0x51   :  { %487 = vmatpush.bf16.msra.mxu2 %v1283_v22  ;;  %475 = vmatpush.bf16.msra.mxu1 %v1307_v30 }
  0x54   :  { %409 = vmatpush.bf16.msra.mxu0 %v1379_v53 }
  0x55   :  { %488 = vmatpush.bf16.msra.mxu2 %v1311_v31  ;;  %476 = vmatpush.bf16.msra.mxu1 %v1335_v39 }
  0x58   :  { %410 = vmatpush.bf16.msra.mxu0 %v1407_v62 }
  0x59   :  { %489 = vmatpush.bf16.msra.mxu2 %v1339_v40  ;;  %477 = vmatpush.bf16.msra.mxu1 %v1363_v48 }
  0x5c   :  { %411 = vmatpush.bf16.msra.mxu0 %v1431_v6 }
  0x5d   :  { %490 = vmatpush.bf16.msra.mxu2 %v1367_v49  ;;  %478 = vmatpush.bf16.msra.mxu1 %v1391_v57 }
  0x60   :  { %412 = vmatpush.bf16.msra.mxu0 %v1445_v13 }
  0x61   :  { %491 = vmatpush.bf16.msra.mxu2 %v1395_v58  ;;  %479 = vmatpush.bf16.msra.mxu1 %v1419_v2 }
  0x65   :  { %492 = vmatpush.bf16.msra.mxu2 %v1428_v5 }
  0xa0   :  { %v200_v16 = vpop.f32.mrf.mxu0 }
  0xa1   :  { %v234_v17 = vadd.f32 %v200_v16, %v59_v14 }
  0xa3   :  { %v213_v20 = vpop.f32.mrf.mxu1  ;;  %v1037_v23 = vmul.f32 -1.442695, %v234_v17 }
  0xa4   :  { %v235_v21 = vadd.f32 %v213_v20, %v60_v15 }
  0xa5   :  { %1106 = vpow2.f32 %v1037_v23 }
  0xa6   :  { %v1038_v24 = vmul.f32 -1.442695, %v235_v21 }
  0xa8   :  { %1108 = vpow2.f32 %v1038_v24  ;;  %v202_v25 = vpop.f32.mrf.mxu0 }
  0xab   :  { %v215_v27 = vpop.f32.mrf.mxu1  ;;  %v1107_v28 = vpop.eup %1106 }
  0xac   :  { %v242_v33 = vadd.f32 1.0, %v1107_v28 }
  0xad   :  { %v226_v29 = vpop.f32.mrf.mxu2 }
  0xae   :  { %v1109_v32 = vpop.eup %1108  ;;  %1110 = vrcp.f32 %v242_v33  ;;  %v255_v46 = vand.u32 2147483648, %v242_v33  ;;  %v253_v50 = vand.u32 2147483647, %v242_v33  ;;  %v233_v51 = vadd.f32 %v1513_v42, %v226_v29  ;;  %v1039_v29 = vld [vmem:[%s1762_s0 + $0x18] sm:$0xff] }
  0xaf   :  { %v243_v34 = vadd.f32 1.0, %v1109_v32  ;;  %vm249_vm1 = vweird.f32 %v242_v33 }
  0xb0   :  { %v256_v55 = vor.u32 1.1754944e-38, %v255_v46  ;;  %vm254_vm3 = vcmp.eq.f32.partialorder %v253_v50, 8.507059e+37 }
  0xb1   :  { %1112 = vrcp.f32 %v243_v34  ;;  %vm264_vm4 = vweird.f32 %v243_v34  ;;  %v270_v1 = vand.u32 2147483648, %v243_v34  ;;  %v268_v9 = vand.u32 2147483647, %v243_v34 }
  0xb3   :  { %v271_v12 = vor.u32 1.1754944e-38, %v270_v1  ;;  %vm269_vm7 = vcmp.eq.f32.partialorder %v268_v9, 8.507059e+37  ;;  %v1041_v9 = vld [vmem:[%s1762_s0 + $0x28] sm:$0xff] }
  0xb4   :  { %v1111_v37 = vpop.eup %1110 }
  0xb5   :  { %v228_v36 = vpop.f32.mrf.mxu2  ;;  %v245_v41 = vmul.f32 %v1111_v37, %v242_v33  ;;  %vm250_vm0 = vweird.f32 %v1111_v37 }
  0xb6   :  { %vm251_vm2 = vmor %vm249_vm1, %vm250_vm0 }
  0xb7   :  { %v1113_v38 = vpop.eup %1112  ;;  %v246_v43 = vsub.f32 1.0, %v245_v41 }
  0xb8   :  { %v260_v45 = vmul.f32 %v1113_v38, %v243_v34  ;;  %vm265_vm5 = vweird.f32 %v1113_v38 }
  0xb9   :  { %v247_v47 = vmul.f32 %v1111_v37, %v246_v43  ;;  %vm266_vm6 = vmor %vm264_vm4, %vm265_vm5 }
  0xba   :  { %v261_v54 = vsub.f32 1.0, %v260_v45 }
  0xbb   :  { %v248_v52 = vadd.f32 %v1111_v37, %v247_v47 }
  0xbc   :  { %v262_v63 = vmul.f32 %v1113_v38, %v261_v54 }
  0xbd   :  { %v252_v56 = vsel %vm251_vm2, %v1111_v37, %v248_v52 }
  0xbe   :  { %v257_v60 = vsel %vm254_vm3, %v256_v55, %v252_v56  ;;  %v263_v8 = vadd.f32 %v1113_v38, %v262_v63 }
  0xbf   :  { %v274_v61 = vmul.f32 %v257_v60, %v233_v51 }
  0xc0   :  { %v267_v14 = vsel %vm266_vm6, %v1113_v38, %v263_v8 }
  0xc1   :  { %v275_v0 = vadd.f32 %v274_v61, %v61_v59  ;;  %v272_v17 = vsel %vm269_vm7, %v271_v12, %v267_v14 }
  0xc3   :  { %1114 = vtanh.f32 %v275_v0 }
  0xc9   :  { %v1115_v15 = vpop.eup %1114 }
  0xca   :  { %v277_v16 = vsub.f32 %v1424_v4, %v1115_v15  ;;  %v1040_v4 = vld [vmem:[%s1762_s0 + $0x20] sm:$0xff] }
  0xcc   :  { %v278_v20 = vmul.f32 %v277_v16, %v272_v17 }
  0xce   :  { %v1520_v21 = vadd.f32 %v1115_v15, %v278_v20 }
  0xd0   :  { %280 = vst [vmem:[%s1763_s4] sm:$0xff] %v1520_v21  ;;  %v285_v23 = vpack.c.bf16 %v1520_v21, %v1520_v21 }
  0xd2   :  { %294 = vmatmul.bf16.vlgmr.msra.gmra.mxu3 %v285_v23  ;;  %307 = vmatmul.bf16.vlgmr.msrb.gmra.mxu0 %v285_v23 }
  0xd3   :  { %320 = vmatmul.bf16.vlgmr.msrb.gmra.mxu1 %v285_v23  ;;  %498 = vmatpush.bf16.msra.mxu3 %v1270_v18 }
  0xd4   :  { %565 = vmatpush.bf16.msrb.mxu0 %v1226_v3  ;;  %578 = vmatpush.bf16.msrb.mxu1 %v1237_v7 }
  0xd7   :  { %499 = vmatpush.bf16.msra.mxu3 %v1295_v26 }
  0xd8   :  { %566 = vmatpush.bf16.msrb.mxu0 %v1246_v10  ;;  %579 = vmatpush.bf16.msrb.mxu1 %v1250_v11 }
  0xdb   :  { %500 = vmatpush.bf16.msra.mxu3 %v1323_v35 }
  0xdc   :  { %567 = vmatpush.bf16.msrb.mxu0 %v1273_v19  ;;  %580 = vmatpush.bf16.msrb.mxu1 %v1283_v22 }
  0xdf   :  { %501 = vmatpush.bf16.msra.mxu3 %v1351_v44 }
  0xe0   :  { %568 = vmatpush.bf16.msrb.mxu0 %v1307_v30  ;;  %581 = vmatpush.bf16.msrb.mxu1 %v1311_v31 }
  0xe3   :  { %502 = vmatpush.bf16.msra.mxu3 %v1379_v53 }
  0xe4   :  { %569 = vmatpush.bf16.msrb.mxu0 %v1335_v39  ;;  %582 = vmatpush.bf16.msrb.mxu1 %v1339_v40 }
  0xe7   :  { %503 = vmatpush.bf16.msra.mxu3 %v1407_v62 }
  0xe8   :  { %570 = vmatpush.bf16.msrb.mxu0 %v1363_v48  ;;  %583 = vmatpush.bf16.msrb.mxu1 %v1367_v49 }
  0xeb   :  { %504 = vmatpush.bf16.msra.mxu3 %v1431_v6 }
  0xec   :  { %571 = vmatpush.bf16.msrb.mxu0 %v1391_v57  ;;  %584 = vmatpush.bf16.msrb.mxu1 %v1395_v58 }
  0xef   :  { %505 = vmatpush.bf16.msra.mxu3 %v1445_v13 }
  0xf0   :  { %572 = vmatpush.bf16.msrb.mxu0 %v1419_v2  ;;  %585 = vmatpush.bf16.msrb.mxu1 %v1428_v5 }
 0x14f   :  { %v308_v24 = vpop.f32.mrf.mxu0 }
 0x150   :  { %v327_v25 = vadd.f32 %v1040_v4, %v308_v24  ;;  %v321_v27 = vpop.f32.mrf.mxu1 }
 0x151   :  { %v325_v0 = vadd.f32 %v1513_v42, %v321_v27 }
 0x152   :  { %v1043_v28 = vmul.f32 -1.442695, %v327_v25 }
 0x154   :  { %1116 = vpow2.f32 %v1043_v28 }
 0x155   :  { %v295_v32 = vpop.f32.mrf.mxu3 }
 0x156   :  { %v326_v33 = vadd.f32 %v1039_v29, %v295_v32 }
 0x157   :  { %v310_v34 = vpop.f32.mrf.mxu0 }
 0x158   :  { %v1042_v36 = vmul.f32 -1.442695, %v326_v33  ;;  %v323_v37 = vpop.f32.mrf.mxu1  ;;  %v1045_v33 = vld [vmem:[%s1762_s0 + $0x30] sm:$0xff]  ;;  %v1046_v34 = vld [vmem:[%s1762_s0 + $0x38] sm:$0xff] }
 0x15a   :  { %1118 = vpow2.f32 %v1042_v36  ;;  %v1117_v38 = vpop.eup %1116 }
 0x15b   :  { %v335_v45 = vadd.f32 1.0, %v1117_v38 }
 0x15d   :  { %v297_v41 = vpop.f32.mrf.mxu3  ;;  %v362_v17 = vand.u32 2147483648, %v335_v45  ;;  %vm356_vm13 = vweird.f32 %v335_v45  ;;  %v360_v20 = vand.u32 2147483647, %v335_v45 }
 0x15f   :  { %v363_v24 = vor.u32 1.1754944e-38, %v362_v17  ;;  %vm361_vm15 = vcmp.eq.f32.partialorder %v360_v20, 8.507059e+37  ;;  %v1047_v20 = vld [vmem:[%s1762_s0 + $0x40] sm:$0xff] }
 0x160   :  { %v1119_v43 = vpop.eup %1118 }
 0x161   :  { %v334_v46 = vadd.f32 1.0, %v1119_v43 }
 0x163   :  { %1120 = vrcp.f32 %v334_v46  ;;  %v347_v55 = vand.u32 2147483648, %v334_v46  ;;  %v345_v59 = vand.u32 2147483647, %v334_v46  ;;  %vm341_vm9 = vweird.f32 %v334_v46 }
 0x164   :  { %1122 = vrcp.f32 %v335_v45 }
 0x165   :  { %v348_v63 = vor.u32 1.1754944e-38, %v347_v55  ;;  %vm346_vm11 = vcmp.eq.f32.partialorder %v345_v59, 8.507059e+37 }
 0x169   :  { %v1121_v47 = vpop.eup %1120 }
 0x16a   :  { %v1123_v50 = vpop.eup %1122  ;;  %v337_v51 = vmul.f32 %v1121_v47, %v334_v46  ;;  %vm342_vm8 = vweird.f32 %v1121_v47 }
 0x16b   :  { %v352_v54 = vmul.f32 %v1123_v50, %v335_v45  ;;  %vm343_vm10 = vmor %vm341_vm9, %vm342_vm8  ;;  %vm357_vm12 = vweird.f32 %v1123_v50 }
 0x16c   :  { %v338_v52 = vsub.f32 1.0, %v337_v51  ;;  %vm358_vm14 = vmor %vm356_vm13, %vm357_vm12 }
 0x16d   :  { %v353_v61 = vsub.f32 1.0, %v352_v54 }
 0x16e   :  { %v339_v56 = vmul.f32 %v1121_v47, %v338_v52 }
 0x16f   :  { %v354_v14 = vmul.f32 %v1123_v50, %v353_v61 }
 0x170   :  { %v340_v60 = vadd.f32 %v1121_v47, %v339_v56 }
 0x171   :  { %v355_v16 = vadd.f32 %v1123_v50, %v354_v14 }
 0x172   :  { %v344_v1 = vsel %vm343_vm10, %v1121_v47, %v340_v60 }
 0x173   :  { %v349_v8 = vsel %vm346_vm11, %v348_v63, %v344_v1  ;;  %v359_v23 = vsel %vm358_vm14, %v1123_v50, %v355_v16 }
 0x174   :  { %v366_v12 = vmul.f32 %v349_v8, %v325_v0  ;;  %v364_v27 = vsel %vm361_vm15, %v363_v24, %v359_v23 }
 0x176   :  { %v367_v15 = vadd.f32 %v1041_v9, %v366_v12 }
 0x178   :  { %1124 = vtanh.f32 %v367_v15 }
 0x17e   :  { %v1125_v4 = vpop.eup %1124 }
 0x17f   :  { %v369_v25 = vsub.f32 %v1520_v21, %v1125_v4 }
 0x181   :  { %v370_v28 = vmul.f32 %v369_v25, %v364_v27 }
 0x183   :  { %v1563_v29 = vadd.f32 %v1125_v4, %v370_v28 }
 0x185   :  { %1044 = vst [vmem:[%s1763_s4 + $0x8] sm:$0xff] %v1563_v29  ;;  %v378_v32 = vpack.c.bf16 %v1563_v29, %v1563_v29 }
 0x187   :  { %387 = vmatmul.bf16.vlgmr.msrb.gmra.mxu2 %v378_v32  ;;  %400 = vmatmul.bf16.vlgmr.msrb.gmra.mxu3 %v378_v32 }
 0x188   :  { %413 = vmatmul.bf16.vlgmr.msra.gmra.mxu0 %v378_v32  ;;  %591 = vmatpush.bf16.msrb.mxu2 %v1270_v18 }
 0x189   :  { %658 = vmatpush.bf16.msrb.mxu3 %v1226_v3  ;;  %671 = vmatpush.bf16.msra.mxu0 %v1237_v7 }
 0x18c   :  { %592 = vmatpush.bf16.msrb.mxu2 %v1295_v26 }
 0x18d   :  { %659 = vmatpush.bf16.msrb.mxu3 %v1246_v10  ;;  %672 = vmatpush.bf16.msra.mxu0 %v1250_v11 }
 0x190   :  { %593 = vmatpush.bf16.msrb.mxu2 %v1323_v35 }
 0x191   :  { %660 = vmatpush.bf16.msrb.mxu3 %v1273_v19  ;;  %673 = vmatpush.bf16.msra.mxu0 %v1283_v22 }
 0x194   :  { %594 = vmatpush.bf16.msrb.mxu2 %v1351_v44 }
 0x195   :  { %661 = vmatpush.bf16.msrb.mxu3 %v1307_v30  ;;  %674 = vmatpush.bf16.msra.mxu0 %v1311_v31 }
 0x198   :  { %595 = vmatpush.bf16.msrb.mxu2 %v1379_v53 }
 0x199   :  { %662 = vmatpush.bf16.msrb.mxu3 %v1335_v39  ;;  %675 = vmatpush.bf16.msra.mxu0 %v1339_v40 }
 0x19c   :  { %596 = vmatpush.bf16.msrb.mxu2 %v1407_v62 }
 0x19d   :  { %663 = vmatpush.bf16.msrb.mxu3 %v1363_v48  ;;  %676 = vmatpush.bf16.msra.mxu0 %v1367_v49 }
 0x1a0   :  { %597 = vmatpush.bf16.msrb.mxu2 %v1431_v6 }
 0x1a1   :  { %664 = vmatpush.bf16.msrb.mxu3 %v1391_v57  ;;  %677 = vmatpush.bf16.msra.mxu0 %v1395_v58 }
 0x1a4   :  { %598 = vmatpush.bf16.msrb.mxu2 %v1445_v13 }
 0x1a5   :  { %665 = vmatpush.bf16.msrb.mxu3 %v1419_v2  ;;  %678 = vmatpush.bf16.msra.mxu0 %v1428_v5 }
 0x205   :  { %v414_v21 = vpop.f32.mrf.mxu0 }
 0x206   :  { %v418_v15 = vadd.f32 %v1513_v42, %v414_v21 }
 0x20a   :  { %v388_v36 = vpop.f32.mrf.mxu2  ;;  %v401_v37 = vpop.f32.mrf.mxu3 }
 0x20b   :  { %v419_v38 = vadd.f32 %v1045_v33, %v388_v36  ;;  %v420_v41 = vadd.f32 %v1046_v34, %v401_v37 }
 0x20d   :  { %v1048_v43 = vmul.f32 -1.442695, %v419_v38  ;;  %v1049_v45 = vmul.f32 -1.442695, %v420_v41  ;;  %v416_v46 = vpop.f32.mrf.mxu0 }
 0x20f   :  { %1126 = vpow2.f32 %v1048_v43 }
 0x210   :  { %1128 = vpow2.f32 %v1049_v45 }
 0x212   :  { %v390_v47 = vpop.f32.mrf.mxu2  ;;  %v403_v50 = vpop.f32.mrf.mxu3 }
 0x213   :  { %v1052_v47 = vld [vmem:[%s1762_s0 + $0x50] sm:$0xff] }
 0x215   :  { %v1127_v51 = vpop.eup %1126 }
 0x216   :  { %v1129_v52 = vpop.eup %1128  ;;  %v427_v54 = vadd.f32 1.0, %v1127_v51 }
 0x217   :  { %v428_v55 = vadd.f32 1.0, %v1129_v52 }
 0x218   :  { %1130 = vrcp.f32 %v427_v54  ;;  %v440_v63 = vand.u32 2147483648, %v427_v54  ;;  %v438_v8 = vand.u32 2147483647, %v427_v54  ;;  %vm434_vm1 = vweird.f32 %v427_v54 }
 0x219   :  { %1132 = vrcp.f32 %v428_v55  ;;  %v455_v27 = vand.u32 2147483648, %v428_v55  ;;  %vm449_vm5 = vweird.f32 %v428_v55  ;;  %v453_v28 = vand.u32 2147483647, %v428_v55 }
 0x21a   :  { %v441_v12 = vor.u32 1.1754944e-38, %v440_v63  ;;  %vm439_vm3 = vcmp.eq.f32.partialorder %v438_v8, 8.507059e+37 }
 0x21b   :  { %v456_v21 = vor.u32 1.1754944e-38, %v455_v27  ;;  %vm454_vm7 = vcmp.eq.f32.partialorder %v453_v28, 8.507059e+37  ;;  %v1053_v27 = vld [vmem:[%s1762_s0 + $0x58] sm:$0xff] }
 0x21e   :  { %v1131_v56 = vpop.eup %1130 }
 0x21f   :  { %v1133_v59 = vpop.eup %1132  ;;  %v430_v60 = vmul.f32 %v1131_v56, %v427_v54  ;;  %vm435_vm0 = vweird.f32 %v1131_v56 }
 0x220   :  { %v445_v0 = vmul.f32 %v1133_v59, %v428_v55  ;;  %vm436_vm2 = vmor %vm434_vm1, %vm435_vm0  ;;  %vm450_vm4 = vweird.f32 %v1133_v59 }
 0x221   :  { %v431_v61 = vsub.f32 1.0, %v430_v60  ;;  %vm451_vm6 = vmor %vm449_vm5, %vm450_vm4 }
 0x222   :  { %v446_v14 = vsub.f32 1.0, %v445_v0 }
 0x223   :  { %v432_v1 = vmul.f32 %v1131_v56, %v431_v61 }
 0x224   :  { %v447_v4 = vmul.f32 %v1133_v59, %v446_v14 }
 0x225   :  { %v433_v9 = vadd.f32 %v1131_v56, %v432_v1 }
 0x226   :  { %v448_v25 = vadd.f32 %v1133_v59, %v447_v4 }
 0x227   :  { %v437_v16 = vsel %vm436_vm2, %v1131_v56, %v433_v9 }
 0x228   :  { %v442_v17 = vsel %vm439_vm3, %v441_v12, %v437_v16  ;;  %v452_v32 = vsel %vm451_vm6, %v1133_v59, %v448_v25 }
 0x229   :  { %v459_v23 = vmul.f32 %v442_v17, %v418_v15  ;;  %v457_v36 = vsel %vm454_vm7, %v456_v21, %v452_v32 }
 0x22b   :  { %v460_v24 = vadd.f32 %v1047_v20, %v459_v23 }
 0x22d   :  { %1134 = vtanh.f32 %v460_v24 }
 0x233   :  { %v1135_v33 = vpop.eup %1134 }
 0x234   :  { %v462_v34 = vsub.f32 %v1563_v29, %v1135_v33  ;;  %v1051_v29 = vld [vmem:[%s1762_s0 + $0x48] sm:$0xff] }
 0x236   :  { %v463_v37 = vmul.f32 %v462_v34, %v457_v36 }
 0x238   :  { %v1606_v38 = vadd.f32 %v1135_v33, %v463_v37 }
 0x23a   :  { %1050 = vst [vmem:[%s1763_s4 + $0x10] sm:$0xff] %v1606_v38  ;;  %v471_v41 = vpack.c.bf16 %v1606_v38, %v1606_v38 }
 0x23c   :  { %480 = vmatmul.bf16.vlgmr.msra.gmra.mxu1 %v471_v41  ;;  %493 = vmatmul.bf16.vlgmr.msra.gmra.mxu2 %v471_v41 }
 0x23d   :  { %506 = vmatmul.bf16.vlgmr.msra.gmra.mxu3 %v471_v41  ;;  %684 = vmatpush.bf16.msra.mxu1 %v1270_v18 }
 0x23e   :  { %751 = vmatpush.bf16.msra.mxu2 %v1226_v3  ;;  %764 = vmatpush.bf16.msra.mxu3 %v1237_v7 }
 0x241   :  { %685 = vmatpush.bf16.msra.mxu1 %v1295_v26 }
 0x242   :  { %752 = vmatpush.bf16.msra.mxu2 %v1246_v10  ;;  %765 = vmatpush.bf16.msra.mxu3 %v1250_v11 }
 0x245   :  { %686 = vmatpush.bf16.msra.mxu1 %v1323_v35 }
 0x246   :  { %753 = vmatpush.bf16.msra.mxu2 %v1273_v19  ;;  %766 = vmatpush.bf16.msra.mxu3 %v1283_v22 }
 0x249   :  { %687 = vmatpush.bf16.msra.mxu1 %v1351_v44 }
 0x24a   :  { %754 = vmatpush.bf16.msra.mxu2 %v1307_v30  ;;  %767 = vmatpush.bf16.msra.mxu3 %v1311_v31 }
 0x24d   :  { %688 = vmatpush.bf16.msra.mxu1 %v1379_v53 }
 0x24e   :  { %755 = vmatpush.bf16.msra.mxu2 %v1335_v39  ;;  %768 = vmatpush.bf16.msra.mxu3 %v1339_v40 }
 0x251   :  { %689 = vmatpush.bf16.msra.mxu1 %v1407_v62 }
 0x252   :  { %756 = vmatpush.bf16.msra.mxu2 %v1363_v48  ;;  %769 = vmatpush.bf16.msra.mxu3 %v1367_v49 }
 0x255   :  { %690 = vmatpush.bf16.msra.mxu1 %v1431_v6 }
 0x256   :  { %757 = vmatpush.bf16.msra.mxu2 %v1391_v57  ;;  %770 = vmatpush.bf16.msra.mxu3 %v1395_v58 }
 0x259   :  { %691 = vmatpush.bf16.msra.mxu1 %v1445_v13 }
 0x25a   :  { %758 = vmatpush.bf16.msra.mxu2 %v1419_v2  ;;  %771 = vmatpush.bf16.msra.mxu3 %v1428_v5 }
 0x2b9   :  { %v481_v43 = vpop.f32.mrf.mxu1 }
 0x2ba   :  { %v512_v45 = vadd.f32 %v1051_v29, %v481_v43 }
 0x2bc   :  { %v1054_v46 = vmul.f32 -1.442695, %v512_v45 }
 0x2be   :  { %1136 = vpow2.f32 %v1054_v46 }
 0x2bf   :  { %v494_v50 = vpop.f32.mrf.mxu2 }
 0x2c0   :  { %v513_v51 = vadd.f32 %v1052_v47, %v494_v50  ;;  %v507_v52 = vpop.f32.mrf.mxu3 }
 0x2c1   :  { %v483_v54 = vpop.f32.mrf.mxu1  ;;  %v511_v24 = vadd.f32 %v1513_v42, %v507_v52 }
 0x2c2   :  { %v1055_v55 = vmul.f32 -1.442695, %v513_v51 }
 0x2c4   :  { %v1137_v56 = vpop.eup %1136  ;;  %1138 = vpow2.f32 %v1055_v55 }
 0x2c5   :  { %v520_v59 = vadd.f32 1.0, %v1137_v56 }
 0x2c7   :  { %1140 = vrcp.f32 %v520_v59  ;;  %v496_v60 = vpop.f32.mrf.mxu2  ;;  %v533_v12 = vand.u32 2147483648, %v520_v59  ;;  %v531_v15 = vand.u32 2147483647, %v520_v59  ;;  %vm527_vm9 = vweird.f32 %v520_v59 }
 0x2c8   :  { %v509_v61 = vpop.f32.mrf.mxu3 }
 0x2c9   :  { %v534_v23 = vor.u32 1.1754944e-38, %v533_v12  ;;  %vm532_vm11 = vcmp.eq.f32.partialorder %v531_v15, 8.507059e+37  ;;  %v1059_v12 = vld [vmem:[%s1762_s0 + $0x70] sm:$0xff] }
 0x2ca   :  { %v1139_v63 = vpop.eup %1138 }
 0x2cb   :  { %v521_v0 = vadd.f32 1.0, %v1139_v63 }
 0x2cd   :  { %v1141_v1 = vpop.eup %1140  ;;  %1142 = vrcp.f32 %v521_v0  ;;  %v548_v36 = vand.u32 2147483648, %v521_v0  ;;  %vm542_vm13 = vweird.f32 %v521_v0  ;;  %v546_v37 = vand.u32 2147483647, %v521_v0 }
 0x2ce   :  { %v523_v8 = vmul.f32 %v1141_v1, %v520_v59  ;;  %vm528_vm8 = vweird.f32 %v1141_v1 }
 0x2cf   :  { %vm529_vm10 = vmor %vm527_vm9, %vm528_vm8  ;;  %v549_v43 = vor.u32 1.1754944e-38, %v548_v36  ;;  %vm547_vm15 = vcmp.eq.f32.partialorder %v546_v37, 8.507059e+37  ;;  %v1064_v36 = vld [vmem:[%s1762_s0 + $0x80] sm:$0xff] }
 0x2d0   :  { %v524_v9 = vsub.f32 1.0, %v523_v8 }
 0x2d2   :  { %v525_v14 = vmul.f32 %v1141_v1, %v524_v9 }
 0x2d3   :  { %v1143_v16 = vpop.eup %1142 }
 0x2d4   :  { %v538_v17 = vmul.f32 %v1143_v16, %v521_v0  ;;  %v526_v20 = vadd.f32 %v1141_v1, %v525_v14  ;;  %vm543_vm12 = vweird.f32 %v1143_v16 }
 0x2d5   :  { %vm544_vm14 = vmor %vm542_vm13, %vm543_vm12 }
 0x2d6   :  { %v539_v4 = vsub.f32 1.0, %v538_v17  ;;  %v530_v25 = vsel %vm529_vm10, %v1141_v1, %v526_v20 }
 0x2d7   :  { %v535_v28 = vsel %vm532_vm11, %v534_v23, %v530_v25 }
 0x2d8   :  { %v552_v32 = vmul.f32 %v535_v28, %v511_v24  ;;  %v540_v33 = vmul.f32 %v1143_v16, %v539_v4 }
 0x2da   :  { %v553_v21 = vadd.f32 %v1053_v27, %v552_v32  ;;  %v541_v34 = vadd.f32 %v1143_v16, %v540_v33 }
 0x2dc   :  { %1144 = vtanh.f32 %v553_v21  ;;  %v545_v41 = vsel %vm544_vm14, %v1143_v16, %v541_v34 }
 0x2dd   :  { %v550_v46 = vsel %vm547_vm15, %v549_v43, %v545_v41 }
 0x2e2   :  { %v1145_v29 = vpop.eup %1144 }
 0x2e3   :  { %v555_v45 = vsub.f32 %v1606_v38, %v1145_v29 }
 0x2e5   :  { %v556_v47 = vmul.f32 %v555_v45, %v550_v46 }
 0x2e7   :  { %v1649_v50 = vadd.f32 %v1145_v29, %v556_v47 }
 0x2e9   :  { %1056 = vst [vmem:[%s1763_s4 + $0x18] sm:$0xff] %v1649_v50  ;;  %v564_v51 = vpack.c.bf16 %v1649_v50, %v1649_v50 }
 0x2eb   :  { %573 = vmatmul.bf16.vlgmr.msrb.gmra.mxu0 %v564_v51  ;;  %586 = vmatmul.bf16.vlgmr.msrb.gmra.mxu1 %v564_v51 }
 0x2ec   :  { %599 = vmatmul.bf16.vlgmr.msrb.gmra.mxu2 %v564_v51  ;;  %777 = vmatpush.bf16.msrb.mxu0 %v1270_v18 }
 0x2ed   :  { %844 = vmatpush.bf16.msrb.mxu1 %v1226_v3  ;;  %857 = vmatpush.bf16.msrb.mxu2 %v1237_v7  ;;  %v1057_v3 = vld [vmem:[%s1762_s0 + $0x60] sm:$0xff]  ;;  %v1058_v7 = vld [vmem:[%s1762_s0 + $0x68] sm:$0xff] }
 0x2f0   :  { %778 = vmatpush.bf16.msrb.mxu0 %v1295_v26 }
 0x2f1   :  { %845 = vmatpush.bf16.msrb.mxu1 %v1246_v10  ;;  %858 = vmatpush.bf16.msrb.mxu2 %v1250_v11 }
 0x2f4   :  { %779 = vmatpush.bf16.msrb.mxu0 %v1323_v35 }
 0x2f5   :  { %846 = vmatpush.bf16.msrb.mxu1 %v1273_v19  ;;  %859 = vmatpush.bf16.msrb.mxu2 %v1283_v22 }
 0x2f8   :  { %780 = vmatpush.bf16.msrb.mxu0 %v1351_v44 }
 0x2f9   :  { %847 = vmatpush.bf16.msrb.mxu1 %v1307_v30  ;;  %860 = vmatpush.bf16.msrb.mxu2 %v1311_v31 }
 0x2fc   :  { %781 = vmatpush.bf16.msrb.mxu0 %v1379_v53 }
 0x2fd   :  { %848 = vmatpush.bf16.msrb.mxu1 %v1335_v39  ;;  %861 = vmatpush.bf16.msrb.mxu2 %v1339_v40 }
 0x300   :  { %782 = vmatpush.bf16.msrb.mxu0 %v1407_v62 }
 0x301   :  { %849 = vmatpush.bf16.msrb.mxu1 %v1363_v48  ;;  %862 = vmatpush.bf16.msrb.mxu2 %v1367_v49 }
 0x304   :  { %783 = vmatpush.bf16.msrb.mxu0 %v1431_v6 }
 0x305   :  { %850 = vmatpush.bf16.msrb.mxu1 %v1391_v57  ;;  %863 = vmatpush.bf16.msrb.mxu2 %v1395_v58 }
 0x308   :  { %784 = vmatpush.bf16.msrb.mxu0 %v1445_v13 }
 0x309   :  { %851 = vmatpush.bf16.msrb.mxu1 %v1419_v2  ;;  %864 = vmatpush.bf16.msrb.mxu2 %v1428_v5 }
 0x368   :  { %v574_v10 = vpop.f32.mrf.mxu0  ;;  %v587_v11 = vpop.f32.mrf.mxu1 }
 0x369   :  { %v605_v19 = vadd.f32 %v1057_v3, %v574_v10  ;;  %v606_v22 = vadd.f32 %v1058_v7, %v587_v11 }
 0x36b   :  { %v1060_v30 = vmul.f32 -1.442695, %v605_v19  ;;  %v1061_v31 = vmul.f32 -1.442695, %v606_v22 }
 0x36d   :  { %1146 = vpow2.f32 %v1060_v30 }
 0x36e   :  { %1148 = vpow2.f32 %v1061_v31 }
 0x36f   :  { %v600_v39 = vpop.f32.mrf.mxu2 }
 0x370   :  { %v576_v40 = vpop.f32.mrf.mxu0  ;;  %v589_v48 = vpop.f32.mrf.mxu1  ;;  %v604_v8 = vadd.f32 %v1513_v42, %v600_v39 }
 0x373   :  { %v1147_v49 = vpop.eup %1146 }
 0x374   :  { %v1149_v57 = vpop.eup %1148  ;;  %v613_v58 = vadd.f32 1.0, %v1147_v49 }
 0x375   :  { %v614_v2 = vadd.f32 1.0, %v1149_v57  ;;  %v1065_v57 = vld [vmem:[%s1762_s0 + $0x88] sm:$0xff] }
 0x376   :  { %1150 = vrcp.f32 %v613_v58  ;;  %v626_v59 = vand.u32 2147483648, %v613_v58  ;;  %v624_v61 = vand.u32 2147483647, %v613_v58  ;;  %vm620_vm1 = vweird.f32 %v613_v58 }
 0x377   :  { %1152 = vrcp.f32 %v614_v2  ;;  %v602_v5 = vpop.f32.mrf.mxu2  ;;  %v641_v23 = vand.u32 2147483648, %v614_v2  ;;  %vm635_vm5 = vweird.f32 %v614_v2  ;;  %v639_v4 = vand.u32 2147483647, %v614_v2 }
 0x378   :  { %v627_v1 = vor.u32 1.1754944e-38, %v626_v59  ;;  %vm625_vm3 = vcmp.eq.f32.partialorder %v624_v61, 8.507059e+37 }
 0x379   :  { %v642_v27 = vor.u32 1.1754944e-38, %v641_v23  ;;  %vm640_vm7 = vcmp.eq.f32.partialorder %v639_v4, 8.507059e+37 }
 0x37c   :  { %v1151_v38 = vpop.eup %1150 }
 0x37d   :  { %v1153_v52 = vpop.eup %1152  ;;  %v616_v54 = vmul.f32 %v1151_v38, %v613_v58  ;;  %vm621_vm0 = vweird.f32 %v1151_v38 }
 0x37e   :  { %v631_v56 = vmul.f32 %v1153_v52, %v614_v2  ;;  %vm622_vm2 = vmor %vm620_vm1, %vm621_vm0  ;;  %vm636_vm4 = vweird.f32 %v1153_v52 }
 0x37f   :  { %v617_v55 = vsub.f32 1.0, %v616_v54  ;;  %vm637_vm6 = vmor %vm635_vm5, %vm636_vm4 }
 0x380   :  { %v632_v0 = vsub.f32 1.0, %v631_v56 }
 0x381   :  { %v618_v60 = vmul.f32 %v1151_v38, %v617_v55 }
 0x382   :  { %v633_v16 = vmul.f32 %v1153_v52, %v632_v0 }
 0x383   :  { %v619_v63 = vadd.f32 %v1151_v38, %v618_v60 }
 0x384   :  { %v634_v20 = vadd.f32 %v1153_v52, %v633_v16 }
 0x385   :  { %v623_v9 = vsel %vm622_vm2, %v1151_v38, %v619_v63 }
 0x386   :  { %v628_v14 = vsel %vm625_vm3, %v627_v1, %v623_v9  ;;  %v638_v24 = vsel %vm637_vm6, %v1153_v52, %v634_v20  ;;  %v1069_v9 = vld [vmem:[%s1762_s0 + $0x90] sm:$0xff] }
 0x387   :  { %v645_v15 = vmul.f32 %v628_v14, %v604_v8  ;;  %v643_v32 = vsel %vm640_vm7, %v642_v27, %v638_v24 }
 0x389   :  { %v646_v17 = vadd.f32 %v1059_v12, %v645_v15  ;;  %v1070_v12 = vld [vmem:[%s1762_s0 + $0x98] sm:$0xff] }
 0x38b   :  { %1154 = vtanh.f32 %v646_v17 }
 0x391   :  { %v1155_v25 = vpop.eup %1154 }
 0x392   :  { %v648_v28 = vsub.f32 %v1649_v50, %v1155_v25 }
 0x394   :  { %v649_v33 = vmul.f32 %v648_v28, %v643_v32 }
 0x396   :  { %v1692_v21 = vadd.f32 %v1155_v25, %v649_v33 }
 0x398   :  { %1062 = vst [vmem:[%s1763_s4 + $0x20] sm:$0xff] %v1692_v21  ;;  %v657_v34 = vpack.c.bf16 %v1692_v21, %v1692_v21 }
 0x39a   :  { %666 = vmatmul.bf16.vlgmr.msrb.gmra.mxu3 %v657_v34  ;;  %679 = vmatmul.bf16.vlgmr.msra.gmra.mxu0 %v657_v34 }
 0x39b   :  { %692 = vmatmul.bf16.vlgmr.msra.gmra.mxu1 %v657_v34  ;;  %870 = vmatpush.bf16.msrb.mxu3 %v1270_v18 }
 0x39f   :  { %871 = vmatpush.bf16.msrb.mxu3 %v1295_v26 }
 0x3a3   :  { %872 = vmatpush.bf16.msrb.mxu3 %v1323_v35  ;;  %v1063_v35 = vld [vmem:[%s1762_s0 + $0x78] sm:$0xff] }
 0x3a7   :  { %873 = vmatpush.bf16.msrb.mxu3 %v1351_v44 }
 0x3ab   :  { %874 = vmatpush.bf16.msrb.mxu3 %v1379_v53 }
 0x3af   :  { %875 = vmatpush.bf16.msrb.mxu3 %v1407_v62 }
 0x3b3   :  { %876 = vmatpush.bf16.msrb.mxu3 %v1431_v6 }
 0x3b7   :  { %877 = vmatpush.bf16.msrb.mxu3 %v1445_v13 }
 0x417   :  { %v680_v37 = vpop.f32.mrf.mxu0 }
 0x418   :  { %v699_v18 = vadd.f32 %v1064_v36, %v680_v37  ;;  %v693_v41 = vpop.f32.mrf.mxu1 }
 0x419   :  { %v697_v40 = vadd.f32 %v1513_v42, %v693_v41 }
 0x41a   :  { %v1067_v26 = vmul.f32 -1.442695, %v699_v18 }
 0x41c   :  { %1156 = vpow2.f32 %v1067_v26 }
 0x41d   :  { %v667_v44 = vpop.f32.mrf.mxu3 }
 0x41e   :  { %v698_v53 = vadd.f32 %v1063_v35, %v667_v44 }
 0x41f   :  { %v682_v62 = vpop.f32.mrf.mxu0 }
 0x420   :  { %v1066_v29 = vmul.f32 -1.442695, %v698_v53  ;;  %v695_v6 = vpop.f32.mrf.mxu1 }
 0x422   :  { %1158 = vpow2.f32 %v1066_v29  ;;  %v1157_v13 = vpop.eup %1156 }
 0x423   :  { %v707_v46 = vadd.f32 1.0, %v1157_v13 }
 0x425   :  { %v669_v43 = vpop.f32.mrf.mxu3  ;;  %v734_v52 = vand.u32 2147483648, %v707_v46  ;;  %vm728_vm13 = vweird.f32 %v707_v46  ;;  %v732_v54 = vand.u32 2147483647, %v707_v46 }
 0x426   :  { %v1071_v43 = vld [vmem:[%s1762_s0 + $0xa0] sm:$0xff] }
 0x427   :  { %v735_v59 = vor.u32 1.1754944e-38, %v734_v52  ;;  %vm733_vm15 = vcmp.eq.f32.partialorder %v732_v54, 8.507059e+37 }
 0x428   :  { %v1159_v45 = vpop.eup %1158 }
 0x429   :  { %v706_v47 = vadd.f32 1.0, %v1159_v45 }
 0x42b   :  { %1160 = vrcp.f32 %v706_v47  ;;  %v719_v11 = vand.u32 2147483648, %v706_v47  ;;  %v717_v22 = vand.u32 2147483647, %v706_v47  ;;  %vm713_vm9 = vweird.f32 %v706_v47 }
 0x42c   :  { %1162 = vrcp.f32 %v707_v46 }
 0x42d   :  { %v720_v39 = vor.u32 1.1754944e-38, %v719_v11  ;;  %vm718_vm11 = vcmp.eq.f32.partialorder %v717_v22, 8.507059e+37 }
 0x431   :  { %v1161_v50 = vpop.eup %1160 }
 0x432   :  { %v1163_v51 = vpop.eup %1162  ;;  %v709_v3 = vmul.f32 %v1161_v50, %v706_v47  ;;  %vm714_vm8 = vweird.f32 %v1161_v50 }
 0x433   :  { %v724_v10 = vmul.f32 %v1163_v51, %v707_v46  ;;  %vm715_vm10 = vmor %vm713_vm9, %vm714_vm8  ;;  %vm729_vm12 = vweird.f32 %v1163_v51 }
 0x434   :  { %v710_v7 = vsub.f32 1.0, %v709_v3  ;;  %vm730_vm14 = vmor %vm728_vm13, %vm729_vm12 }
 0x435   :  { %v725_v31 = vsub.f32 1.0, %v724_v10 }
 0x436   :  { %v711_v19 = vmul.f32 %v1161_v50, %v710_v7 }
 0x437   :  { %v726_v2 = vmul.f32 %v1163_v51, %v725_v31 }
 0x438   :  { %v712_v30 = vadd.f32 %v1161_v50, %v711_v19 }
 0x439   :  { %v727_v38 = vadd.f32 %v1163_v51, %v726_v2 }
 0x43a   :  { %v716_v48 = vsel %vm715_vm10, %v1161_v50, %v712_v30 }
 0x43b   :  { %v721_v49 = vsel %vm718_vm11, %v720_v39, %v716_v48  ;;  %v731_v55 = vsel %vm730_vm14, %v1163_v51, %v727_v38  ;;  %v1075_v39 = vld [vmem:[%s1762_s0 + $0xa8] sm:$0xff] }
 0x43c   :  { %v738_v58 = vmul.f32 %v721_v49, %v697_v40  ;;  %v736_v61 = vsel %vm733_vm15, %v735_v59, %v731_v55 }
 0x43e   :  { %v739_v5 = vadd.f32 %v1065_v57, %v738_v58  ;;  %v1076_v57 = vld [vmem:[%s1762_s0 + $0xb0] sm:$0xff] }
 0x440   :  { %1164 = vtanh.f32 %v739_v5 }
 0x446   :  { %v1165_v56 = vpop.eup %1164 }
 0x447   :  { %v741_v60 = vsub.f32 %v1692_v21, %v1165_v56 }
 0x449   :  { %v742_v63 = vmul.f32 %v741_v60, %v736_v61 }
 0x44b   :  { %v743_v0 = vadd.f32 %v1165_v56, %v742_v63 }
 0x44d   :  { %1068 = vst [vmem:[%s1763_s4 + $0x28] sm:$0xff] %v743_v0  ;;  %v750_v1 = vpack.c.bf16 %v743_v0, %v743_v0 }
 0x44f   :  { %759 = vmatmul.bf16.vlgmr.msra.gmra.mxu2 %v750_v1  ;;  %772 = vmatmul.bf16.vlgmr.msra.gmra.mxu3 %v750_v1 }
 0x450   :  { %785 = vmatmul.bf16.vlgmr.msrb.gmra.mxu0 %v750_v1 }
 0x4cd   :  { %v786_v8 = vpop.f32.mrf.mxu0 }
 0x4ce   :  { %v790_v29 = vadd.f32 %v1513_v42, %v786_v8 }
 0x4d2   :  { %v760_v14 = vpop.f32.mrf.mxu2  ;;  %v773_v15 = vpop.f32.mrf.mxu3 }
 0x4d3   :  { %v791_v16 = vadd.f32 %v1069_v9, %v760_v14  ;;  %v792_v17 = vadd.f32 %v1070_v12, %v773_v15 }
 0x4d5   :  { %v1072_v20 = vmul.f32 -1.442695, %v791_v16  ;;  %v1073_v23 = vmul.f32 -1.442695, %v792_v17  ;;  %v788_v4 = vpop.f32.mrf.mxu0 }
 0x4d7   :  { %1166 = vpow2.f32 %v1072_v20 }
 0x4d8   :  { %1168 = vpow2.f32 %v1073_v23  ;;  %v1186_v23 = vld [vmem:[%s1761_s3] ss:$0 sm:$0xff] }
 0x4da   :  { %v762_v24 = vpop.f32.mrf.mxu2  ;;  %v775_v25 = vpop.f32.mrf.mxu3 }
 0x4db   :  { %v1077_v25 = vld [vmem:[%s1762_s0 + $0xb8] sm:$0xff] }
 0x4dd   :  { %v1167_v27 = vpop.eup %1166 }
 0x4de   :  { %v1169_v28 = vpop.eup %1168  ;;  %v799_v32 = vadd.f32 1.0, %v1167_v27 }
 0x4df   :  { %v800_v33 = vadd.f32 1.0, %v1169_v28 }
 0x4e0   :  { %1170 = vrcp.f32 %v799_v32  ;;  %v812_v18 = vand.u32 2147483648, %v799_v32  ;;  %v810_v35 = vand.u32 2147483647, %v799_v32  ;;  %vm806_vm1 = vweird.f32 %v799_v32 }
 0x4e1   :  { %1172 = vrcp.f32 %v800_v33  ;;  %v827_v51 = vand.u32 2147483648, %v800_v33  ;;  %vm821_vm5 = vweird.f32 %v800_v33  ;;  %v825_v3 = vand.u32 2147483647, %v800_v33 }
 0x4e2   :  { %v813_v53 = vor.u32 1.1754944e-38, %v812_v18  ;;  %vm811_vm3 = vcmp.eq.f32.partialorder %v810_v35, 8.507059e+37 }
 0x4e3   :  { %v828_v42 = vor.u32 1.1754944e-38, %v827_v51  ;;  %vm826_vm7 = vcmp.eq.f32.partialorder %v825_v3, 8.507059e+37 }
 0x4e6   :  { %v1171_v21 = vpop.eup %1170 }
 0x4e7   :  { %v1173_v34 = vpop.eup %1172  ;;  %v802_v36 = vmul.f32 %v1171_v21, %v799_v32  ;;  %vm807_vm0 = vweird.f32 %v1171_v21 }
 0x4e8   :  { %v817_v41 = vmul.f32 %v1173_v34, %v800_v33  ;;  %vm808_vm2 = vmor %vm806_vm1, %vm807_vm0  ;;  %vm822_vm4 = vweird.f32 %v1173_v34 }
 0x4e9   :  { %v803_v37 = vsub.f32 1.0, %v802_v36  ;;  %vm823_vm6 = vmor %vm821_vm5, %vm822_vm4 }
 0x4ea   :  { %v818_v62 = vsub.f32 1.0, %v817_v41 }
 0x4eb   :  { %v804_v26 = vmul.f32 %v1171_v21, %v803_v37 }
 0x4ec   :  { %v819_v46 = vmul.f32 %v1173_v34, %v818_v62 }
 0x4ed   :  { %v805_v44 = vadd.f32 %v1171_v21, %v804_v26 }
 0x4ee   :  { %v820_v50 = vadd.f32 %v1173_v34, %v819_v46 }
 0x4ef   :  { %v809_v6 = vsel %vm808_vm2, %v1171_v21, %v805_v44 }
 0x4f0   :  { %v814_v13 = vsel %vm811_vm3, %v813_v53, %v809_v6  ;;  %v824_v7 = vsel %vm823_vm6, %v1173_v34, %v820_v50 }
 0x4f1   :  { %v831_v45 = vmul.f32 %v814_v13, %v790_v29  ;;  %v829_v19 = vsel %vm826_vm7, %v828_v42, %v824_v7 }
 0x4f3   :  { %v832_v47 = vadd.f32 %v1071_v43, %v831_v45 }
 0x4f5   :  { %1174 = vtanh.f32 %v832_v47 }
 0x4fb   :  { %v1175_v10 = vpop.eup %1174 }
 0x4fc   :  { %v834_v11 = vsub.f32 %v743_v0, %v1175_v10 }
 0x4fe   :  { %v835_v22 = vmul.f32 %v834_v11, %v829_v19 }
 0x500   :  { %v1732_v30 = vadd.f32 %v1175_v10, %v835_v22 }
 0x502   :  { %1074 = vst [vmem:[%s1763_s4 + $0x30] sm:$0xff] %v1732_v30  ;;  %v843_v31 = vpack.c.bf16 %v1732_v30, %v1732_v30 }
 0x504   :  { %852 = vmatmul.bf16.vlgmr.msrb.gmra.mxu1 %v843_v31  ;;  %865 = vmatmul.bf16.vlgmr.msrb.gmra.mxu2 %v843_v31 }
 0x505   :  { %878 = vmatmul.bf16.vlgmr.msrb.gmra.mxu3 %v843_v31 }
 0x581   :  { %v853_v40 = vpop.f32.mrf.mxu1 }
 0x582   :  { %v884_v48 = vadd.f32 %v1075_v39, %v853_v40 }
 0x584   :  { %v1078_v49 = vmul.f32 -1.442695, %v884_v48 }
 0x586   :  { %1176 = vpow2.f32 %v1078_v49 }
 0x587   :  { %v866_v58 = vpop.f32.mrf.mxu2 }
 0x588   :  { %v885_v2 = vadd.f32 %v1076_v57, %v866_v58  ;;  %v879_v5 = vpop.f32.mrf.mxu3 }
 0x589   :  { %v855_v38 = vpop.f32.mrf.mxu1  ;;  %v883_v4 = vadd.f32 %v1186_v23, %v879_v5 }
 0x58a   :  { %v1079_v52 = vmul.f32 -1.442695, %v885_v2 }
 0x58c   :  { %v1177_v54 = vpop.eup %1176  ;;  %1178 = vpow2.f32 %v1079_v52 }
 0x58d   :  { %v892_v55 = vadd.f32 1.0, %v1177_v54 }
 0x58f   :  { %1180 = vrcp.f32 %v892_v55  ;;  %v868_v56 = vpop.f32.mrf.mxu2  ;;  %v905_v8 = vand.u32 2147483648, %v892_v55  ;;  %v903_v12 = vand.u32 2147483647, %v892_v55  ;;  %vm899_vm9 = vweird.f32 %v892_v55 }
 0x590   :  { %v881_v59 = vpop.f32.mrf.mxu3 }
 0x591   :  { %v906_v17 = vor.u32 1.1754944e-38, %v905_v8  ;;  %vm904_vm11 = vcmp.eq.f32.partialorder %v903_v12, 8.507059e+37 }
 0x592   :  { %v1179_v60 = vpop.eup %1178 }
 0x593   :  { %v893_v61 = vadd.f32 1.0, %v1179_v60 }
 0x595   :  { %v1181_v63 = vpop.eup %1180  ;;  %1182 = vrcp.f32 %v893_v61  ;;  %v920_v34 = vand.u32 2147483648, %v893_v61  ;;  %vm914_vm13 = vweird.f32 %v893_v61  ;;  %v918_v36 = vand.u32 2147483647, %v893_v61 }
 0x596   :  { %v895_v0 = vmul.f32 %v1181_v63, %v892_v55  ;;  %vm900_vm8 = vweird.f32 %v1181_v63 }
 0x597   :  { %vm901_vm10 = vmor %vm899_vm9, %vm900_vm8  ;;  %v921_v41 = vor.u32 1.1754944e-38, %v920_v34  ;;  %vm919_vm15 = vcmp.eq.f32.partialorder %v918_v36, 8.507059e+37 }
 0x598   :  { %v896_v1 = vsub.f32 1.0, %v895_v0 }
 0x59a   :  { %v897_v9 = vmul.f32 %v1181_v63, %v896_v1 }
 0x59b   :  { %v1183_v14 = vpop.eup %1182 }
 0x59c   :  { %v910_v15 = vmul.f32 %v1183_v14, %v893_v61  ;;  %v898_v16 = vadd.f32 %v1181_v63, %v897_v9  ;;  %vm915_vm12 = vweird.f32 %v1183_v14 }
 0x59d   :  { %vm916_vm14 = vmor %vm914_vm13, %vm915_vm12 }
 0x59e   :  { %v911_v20 = vsub.f32 1.0, %v910_v15  ;;  %v902_v24 = vsel %vm901_vm10, %v1181_v63, %v898_v16 }
 0x59f   :  { %v907_v27 = vsel %vm904_vm11, %v906_v17, %v902_v24 }
 0x5a0   :  { %v924_v28 = vmul.f32 %v907_v27, %v883_v4  ;;  %v912_v32 = vmul.f32 %v1183_v14, %v911_v20 }
 0x5a2   :  { %v925_v33 = vadd.f32 %v1077_v25, %v924_v28  ;;  %v913_v21 = vadd.f32 %v1183_v14, %v912_v32 }
 0x5a4   :  { %1184 = vtanh.f32 %v925_v33  ;;  %v917_v37 = vsel %vm916_vm14, %v1183_v14, %v913_v21 }
 0x5a5   :  { %v922_v35 = vsel %vm919_vm15, %v921_v41, %v917_v37 }
 0x5aa   :  { %v1185_v18 = vpop.eup %1184 }
 0x5ab   :  { %v927_v26 = vsub.f32 %v1732_v30, %v1185_v18 }
 0x5ad   :  { %v928_v44 = vmul.f32 %v927_v26, %v922_v35 }
 0x5af   :  { %v929_v53 = vadd.f32 %v1185_v18, %v928_v44 }
 0x5b1   :  { %1080 = vst [vmem:[%s1763_s4 + $0x38] sm:$0xff] %v929_v53 }
 0x5b2   :  { %932 = vst [vmem:[%s1764_s5] sm:$0xff] %v929_v53 }

</bundles_post_ra>
